<compile_context>
chip_gen: v7x
topology: tpu7x:2x2x1
jax: 0.10.0
libtpu: 0.0.40
codegen_flags: <defaults>
</compile_context>

<pallas_src>
import functools

import jax
import jax.numpy as jnp
from jax.experimental import pallas as pl
from jax.experimental.pallas import tpu as pltpu


# ----------------------------------------------------------------------------
# Pallas kernel: one H-strip per grid step, 3 large-K MXU matmuls (one per kh)
# ----------------------------------------------------------------------------
def hetconv_kernel(x_ref, w_ref, b_ref, o_ref):
    # x_ref: (1, TH+2, (W+2)*C)  bf16  row strip with 1-row halo top/bottom
    # w_ref: (3, (W+2)*C, W*C)   bf16  banded merged weights, one band per kh
    # b_ref: (1, W*C)            f32   merged bias, tiled over W
    # o_ref: (1, TH, W*C)        f32   lane-dense output strip
    TH = o_ref.shape[1]
    acc = jnp.dot(x_ref[0, 0:TH, :], w_ref[0],
                  preferred_element_type=jnp.float32)
    for kh in (1, 2):  # static unroll; kh-shifted slabs, kw folded into the band
        acc = acc + jnp.dot(x_ref[0, kh:kh + TH, :], w_ref[kh],
                            preferred_element_type=jnp.float32)
    o_ref[0] = (acc + b_ref[...]).astype(o_ref.dtype)


# ----------------------------------------------------------------------------
# Wrapper: NCHW in / NCHW out.  Layout plumbing only (transpose / pad / strip).
# ----------------------------------------------------------------------------
@functools.partial(jax.jit, static_argnames=("tile_h",))
def efficient_hetconv2d(x_nchw, w_band_bf16, b_band_f32, *, tile_h=8):
    N, C, H, W = x_nchw.shape
    TH = tile_h if (H % tile_h == 0) else H
    n_th = H // TH
    WC2 = (W + 2) * C
    WCO = W * C

    # NHWC, bf16, pad H/W by 1, flatten (W+2, C) -> lane axis
    x = jnp.transpose(x_nchw, (0, 2, 3, 1)).astype(jnp.bfloat16)
    x = jnp.pad(x, ((0, 0), (1, 1), (1, 1), (0, 0)))
    x = x.reshape(N, H + 2, WC2)

    # Overlapping row strips (halo of 2 rows) built once in XLA so the Pallas
    # pipeline uses plain non-overlapping blocks.
    rows = (jnp.arange(n_th) * TH)[:, None] + jnp.arange(TH + 2)[None, :]
    x_strips = x[:, rows, :].reshape(N * n_th, TH + 2, WC2)

    out = pl.pallas_call(
        hetconv_kernel,
        out_shape=jax.ShapeDtypeStruct((N * n_th, TH, WCO), jnp.float32),
        grid_spec=pltpu.PrefetchScalarGridSpec(
            num_scalar_prefetch=0,
            grid=(N * n_th,),
            in_specs=[
                pl.BlockSpec((1, TH + 2, WC2), lambda s: (s, 0, 0)),
                pl.BlockSpec((3, WC2, WCO), lambda s: (0, 0, 0)),
                pl.BlockSpec((1, WCO), lambda s: (0, 0)),
            ],
            out_specs=pl.BlockSpec((1, TH, WCO), lambda s: (s, 0, 0)),
        ),
        compiler_params=pltpu.CompilerParams(
            dimension_semantics=("parallel",)),
    )(x_strips, w_band_bf16, b_band_f32)

    out = out.reshape(N, H, W, C)
    return jnp.transpose(out, (0, 3, 1, 2)).astype(x_nchw.dtype)


# ----------------------------------------------------------------------------
# Parameter prep (plain JAX, done once): merge the three convs into one dense
# (3,3,C,C) weight + bias, then fold the kw taps into a banded matrix.
# ----------------------------------------------------------------------------
def build_merged_params(w3, b3, w1f, b1f, w1g, b1g, p):
    # w3 : (C, C//p, 3, 3)  grouped 3x3   (PyTorch OIHW)
    # w1f: (C, C, 1, 1)     full 1x1
    # w1g: (C, C//p, 1, 1)  grouped 1x1
    C = w3.shape[0]
    g = C // p
    idx = jnp.arange(p)

    # dense grouped 3x3: W3d[kh, kw, c_in, c_out]
    w3r = w3.reshape(p, g, g, 3, 3)                      # [grp, out_l, in_l, kh, kw]
    W3d6 = jnp.zeros((3, 3, p, g, p, g), w3.dtype)
    W3d6 = W3d6.at[:, :, idx, :, idx, :].set(
        jnp.transpose(w3r, (0, 3, 4, 2, 1)))             # [grp, kh, kw, in_l, out_l]
    W3d = W3d6.reshape(3, 3, C, C)

    # dense grouped 1x1: Wg[c_in, c_out]
    w1gr = w1g[..., 0, 0].reshape(p, g, g)               # [grp, out_l, in_l]
    Wg4 = jnp.zeros((p, g, p, g), w1g.dtype)
    Wg4 = Wg4.at[idx, :, idx, :].set(jnp.transpose(w1gr, (0, 2, 1)))
    Wg = Wg4.reshape(C, C)

    # full 1x1: Wf[c_in, c_out]
    Wf = w1f[..., 0, 0].T

    # fold (+ full 1x1 - grouped 1x1) into the centre 3x3 tap
    W_total = W3d.at[1, 1].add(Wf - Wg)
    b_total = b3 + b1f - b1g
    return W_total, b_total


def build_banded_weight(W_total, W):
    # W_total: (3, 3, C, C) [kh, kw, c_in, c_out]
    # Returns B: (3, (W+2)*C, W*C) with
    #   B[kh, w_in*C + c_in, w_out*C + c_out] = W_total[kh, w_in - w_out, c_in, c_out]
    # for 0 <= w_in - w_out <= 2, else 0.
    C = W_total.shape[2]
    win = jnp.arange(W + 2)
    wout = jnp.arange(W)
    dk = win[:, None] - wout[None, :]                    # (W+2, W)
    valid = (dk >= 0) & (dk <= 2)
    dkc = jnp.clip(dk, 0, 2)
    band = W_total[:, dkc, :, :]                         # (3, W+2, W, C, C)
    band = jnp.where(valid[None, :, :, None, None], band, 0.0)
    band = jnp.transpose(band, (0, 1, 3, 2, 4))          # (3, W+2, C, W, C)
    return band.reshape(3, (W + 2) * C, W * C)


# ----------------------------------------------------------------------------
# Pure-JAX references for verification
# ----------------------------------------------------------------------------
def conv_ref(x, w, b, groups, pad):
    out = jax.lax.conv_general_dilated(
        x, w, window_strides=(1, 1), padding=[(pad, pad), (pad, pad)],
        feature_group_count=groups,
        dimension_numbers=("NCHW", "OIHW", "NCHW"),
        precision=jax.lax.Precision.HIGHEST)
    return out + b[None, :, None, None]


def hetconv_ref(x, w3, b3, w1f, b1f, w1g, b1g, p):
    return (conv_ref(x, w3, b3, p, 1)
            + conv_ref(x, w1f, b1f, 1, 0)
            - conv_ref(x, w1g, b1g, p, 0))


if __name__ == "__main__":
    # small shapes consistent with the module: n_feats divisible by p
    N, C, H, W = 2, 32, 16, 16
    p = 4
    g = C // p

    key = jax.random.PRNGKey(0)
    k = jax.random.split(key, 7)
    x = jax.random.normal(k[0], (N, C, H, W), jnp.float32)

    # deterministic synthetic parameters (shapes match nn.Conv2d in __init__)
    w3 = 0.1 * jax.random.normal(k[1], (C, g, 3, 3), jnp.float32)
    b3 = 0.1 * jax.random.normal(k[2], (C,), jnp.float32)
    w1f = 0.1 * jax.random.normal(k[3], (C, C, 1, 1), jnp.float32)
    b1f = 0.1 * jax.random.normal(k[4], (C,), jnp.float32)
    w1g = 0.1 * jax.random.normal(k[5], (C, g, 1, 1), jnp.float32)
    b1g = 0.1 * jax.random.normal(k[6], (C,), jnp.float32)

    W_total, b_total = build_merged_params(w3, b3, w1f, b1f, w1g, b1g, p)
    w_band = build_banded_weight(W_total, W).astype(jnp.bfloat16)
    b_band = jnp.tile(b_total, W).reshape(1, W * C).astype(jnp.float32)

    out = efficient_hetconv2d(x, w_band, b_band, tile_h=8)
    out = jax.block_until_ready(out)
    assert out.shape == (N, C, H, W)

    # Tight check: dense 3x3 conv with the same bf16-quantized x / merged weight
    # (validates the kernel mechanics; only accumulation-order differences left).
    xq = x.astype(jnp.bfloat16).astype(jnp.float32)
    wq = W_total.astype(jnp.bfloat16).astype(jnp.float32)
    w_oihw = jnp.transpose(wq, (3, 2, 0, 1))             # (cout, cin, kh, kw)
    ref_tight = jax.lax.conv_general_dilated(
        xq, w_oihw, (1, 1), [(1, 1), (1, 1)],
        dimension_numbers=("NCHW", "OIHW", "NCHW"),
        precision=jax.lax.Precision.HIGHEST) + b_total[None, :, None, None]
    err_tight = float(jnp.max(jnp.abs(out - ref_tight)))
    assert err_tight < 2e-3, f"tight mismatch vs merged-conv ref: {err_tight}"

    # Loose semantic check vs the original three-conv f32 module
    # (tolerance accounts for the bf16 activation/weight cast).
    ref = hetconv_ref(x, w3, b3, w1f, b1f, w1g, b1g, p)
    err = float(jnp.max(jnp.abs(out - ref)))
    assert err < 1e-1, f"semantic mismatch vs f32 hetconv ref: {err}"

    print("KERNEL_OK")
</pallas_src>

<mosaic_0001>
module attributes {stable_mosaic.version = 11 : i64} {
  func.func @hetconv_kernel(%arg0: i32, %arg1: memref<1x10x576xbf16, #tpu.memory_space<vmem>>, %arg2: memref<3x576x512xbf16, #tpu.memory_space<vmem>>, %arg3: memref<1x512xf32, #tpu.memory_space<vmem>>, %arg4: memref<1x8x512xf32, #tpu.memory_space<vmem>>) attributes {dimension_semantics = [#tpu.dimension_semantics<parallel>], iteration_bounds = array<i64: 4>, scalar_prefetch = 0 : i64, scratch_operands = 0 : i64, tpu.core_type = #tpu.core_type<tc>, window_params = [{transform_indices = @transform_0, window_bounds = array<i64: 1, 10, 576>}, {pipeline_mode = #tpu.pipeline_mode<synchronous>, transform_indices = @transform_1, window_bounds = array<i64: 3, 576, 512>}, {pipeline_mode = #tpu.pipeline_mode<synchronous>, transform_indices = @transform_2, window_bounds = array<i64: 1, 512>}, {transform_indices = @transform_3, window_bounds = array<i64: 1, 8, 512>}]} {
    %c0 = arith.constant 0 : index
    %c0_0 = arith.constant 0 : index
    %c0_1 = arith.constant 0 : index
    %0 = vector.load %arg1[%c0, %c0_0, %c0_1] : memref<1x10x576xbf16, #tpu.memory_space<vmem>>, vector<1x8x576xbf16>
    %1 = vector.shape_cast %0 : vector<1x8x576xbf16> to vector<8x576xbf16>
    %c0_2 = arith.constant 0 : index
    %c0_3 = arith.constant 0 : index
    %c0_4 = arith.constant 0 : index
    %2 = vector.load %arg2[%c0_2, %c0_3, %c0_4] : memref<3x576x512xbf16, #tpu.memory_space<vmem>>, vector<1x576x512xbf16>
    %3 = vector.shape_cast %2 : vector<1x576x512xbf16> to vector<576x512xbf16>
    %cst = arith.constant dense<0.000000e+00> : vector<8x512xf32>
    %4 = tpu.matmul %1, %3, %cst {dimension_numbers = #tpu.dot_dimension_numbers<[1], [0], [0], [1], [0, 0, 1, 1], [], []>} : vector<8x576xbf16>, vector<576x512xbf16>, vector<8x512xf32> -> vector<8x512xf32>
    %c0_5 = arith.constant 0 : index
    %c1 = arith.constant 1 : index
    %c0_6 = arith.constant 0 : index
    %5 = vector.load %arg1[%c0_5, %c1, %c0_6] : memref<1x10x576xbf16, #tpu.memory_space<vmem>>, vector<1x8x576xbf16>
    %6 = vector.shape_cast %5 : vector<1x8x576xbf16> to vector<8x576xbf16>
    %c1_7 = arith.constant 1 : index
    %c0_8 = arith.constant 0 : index
    %c0_9 = arith.constant 0 : index
    %7 = vector.load %arg2[%c1_7, %c0_8, %c0_9] : memref<3x576x512xbf16, #tpu.memory_space<vmem>>, vector<1x576x512xbf16>
    %8 = vector.shape_cast %7 : vector<1x576x512xbf16> to vector<576x512xbf16>
    %cst_10 = arith.constant dense<0.000000e+00> : vector<8x512xf32>
    %9 = tpu.matmul %6, %8, %cst_10 {dimension_numbers = #tpu.dot_dimension_numbers<[1], [0], [0], [1], [0, 0, 1, 1], [], []>} : vector<8x576xbf16>, vector<576x512xbf16>, vector<8x512xf32> -> vector<8x512xf32>
    %10 = arith.addf %4, %9 : vector<8x512xf32>
    %c0_11 = arith.constant 0 : index
    %c2 = arith.constant 2 : index
    %c0_12 = arith.constant 0 : index
    %11 = vector.load %arg1[%c0_11, %c2, %c0_12] : memref<1x10x576xbf16, #tpu.memory_space<vmem>>, vector<1x8x576xbf16>
    %12 = vector.shape_cast %11 : vector<1x8x576xbf16> to vector<8x576xbf16>
    %c2_13 = arith.constant 2 : index
    %c0_14 = arith.constant 0 : index
    %c0_15 = arith.constant 0 : index
    %13 = vector.load %arg2[%c2_13, %c0_14, %c0_15] : memref<3x576x512xbf16, #tpu.memory_space<vmem>>, vector<1x576x512xbf16>
    %14 = vector.shape_cast %13 : vector<1x576x512xbf16> to vector<576x512xbf16>
    %cst_16 = arith.constant dense<0.000000e+00> : vector<8x512xf32>
    %15 = tpu.matmul %12, %14, %cst_16 {dimension_numbers = #tpu.dot_dimension_numbers<[1], [0], [0], [1], [0, 0, 1, 1], [], []>} : vector<8x576xbf16>, vector<576x512xbf16>, vector<8x512xf32> -> vector<8x512xf32>
    %16 = arith.addf %10, %15 : vector<8x512xf32>
    %c0_17 = arith.constant 0 : index
    %c0_18 = arith.constant 0 : index
    %17 = vector.load %arg3[%c0_17, %c0_18] : memref<1x512xf32, #tpu.memory_space<vmem>>, vector<1x512xf32>
    %18 = vector.broadcast %17 : vector<1x512xf32> to vector<8x512xf32>
    %19 = arith.addf %16, %18 : vector<8x512xf32>
    %c0_19 = arith.constant 0 : index
    %c0_20 = arith.constant 0 : index
    %c0_21 = arith.constant 0 : index
    %20 = vector.load %arg4[%c0_19, %c0_20, %c0_21] : memref<1x8x512xf32, #tpu.memory_space<vmem>>, vector<1x8x512xf32>
    %21 = vector.shape_cast %20 : vector<1x8x512xf32> to vector<8x512xf32>
    %22 = vector.shape_cast %19 : vector<8x512xf32> to vector<1x8x512xf32>
    tpu.vector_store %arg4[%c0_19, %c0_20, %c0_21], %22 {strides = array<i32>} : memref<1x8x512xf32, #tpu.memory_space<vmem>>, vector<1x8x512xf32>,
    return
  }
  func.func @transform_0(%arg0: i32) -> (i32, i32, i32) {
    %c0_i32 = arith.constant 0 : i32
    %c0_i32_0 = arith.constant 0 : i32
    %c0_i32_1 = arith.constant 0 : i32
    return %arg0, %c0_i32, %c0_i32_0 : i32, i32, i32
  }
  func.func @transform_1(%arg0: i32) -> (i32, i32, i32) {
    %c0_i32 = arith.constant 0 : i32
    %c0_i32_0 = arith.constant 0 : i32
    %c0_i32_1 = arith.constant 0 : i32
    %c0_i32_2 = arith.constant 0 : i32
    return %c0_i32, %c0_i32_0, %c0_i32_1 : i32, i32, i32
  }
  func.func @transform_2(%arg0: i32) -> (i32, i32) {
    %c0_i32 = arith.constant 0 : i32
    %c0_i32_0 = arith.constant 0 : i32
    %c0_i32_1 = arith.constant 0 : i32
    return %c0_i32, %c0_i32_0 : i32, i32
  }
  func.func @transform_3(%arg0: i32) -> (i32, i32, i32) {
    %c0_i32 = arith.constant 0 : i32
    %c0_i32_0 = arith.constant 0 : i32
    %c0_i32_1 = arith.constant 0 : i32
    return %arg0, %c0_i32, %c0_i32_0 : i32, i32, i32
  }
}

</mosaic_0001>

<bundles_post_ra>
// kernel: efficient_hetconv2d.1
= control target key start
LH: loop header
LB: loop body
LE: loop exit
PB: predicated region body
PF: predicated region fallthrough
CT: control target
= control target key end

     0   :  { %8 = vsyncpa [#allocation3], 0  ;;  %s5248_s0 = inlined_call_operand.vmem [shape: bf16[4,10,576], index: 0, kind: input, shape index: {}]   ;;  %s5249_s1 = inlined_call_operand.hbm [shape: bf16[3,576,512], index: 1, kind: input, shape index: {}]   ;;  %s5250_s2 = inlined_call_operand.hbm [shape: f32[1,512], index: 2, kind: input, shape index: {}]   ;;  %s5251_s3 = inlined_call_operand.vmem [shape: f32[4,8,512], index: 3, kind: output, shape index: {}]  }
   0x1   :  { %9 = vsyncpa [#allocation5], 0  ;;  %s5020_s12 = smov 0  }
   0x2 LB: > { %s5026_s13 = sadd.s32 4294967295, %s4993_s12   ;;  %p3755_p0 = scmp.ge.s32.totalorder %s4993_s12, 1  ;;  %s4993_s12 = sphi %s5020_s12, %s15_s12  }
   0x3   : > { %p114_p1 = scmp.lt.s32.totalorder %s4993_s12, 5  ;;  %s4995_s14 = smov [#allocation2]  }
   0x4   : > { %s126_s15 = sshll.u32 %s4995_s14, 4  ;;  %p5252_p3 = scmp.eq.s32.totalorder %s5026_s13, 0  ;;  %s127_s15 = int_to_ptr.vmem [resolvable:$true] %s126_s15 }
   0x5   : > { %p5030_p2 = pnand %p3755_p0, %p114_p1  ;;  %s4996_s17 = smov [#allocation4]  }
   0x6   : > { %s140_s18 = sshll.u32 %s4996_s17, 4  ;;  %s4923_s22 = scalar_lea.hbm %s5249_s1, 55296  ;;  %s5043_s18 = int_to_ptr.vmem [resolvable:$true] %s140_s18 }
   0x7   : > { %s5254_s16 = scalar_select %p5030_p2, 1, 0 }
   0x8   : > { %p4230_p4 = pneg %p5030_p2  ;;  %p4924_p6 = scmp.ne.s32.totalorder %s5249_s1, %s4923_s22 }
   0x9   : > { %p4930_p10 = scmp.lt.u32.totalorder %s4923_s22, %s5249_s1 }
   0xa   : > { %p5039_p5 = pnand %p5252_p3, %p4230_p4 }
   0xc   : > { %p4925_p7 = pneg %p5039_p5 }
   0xe   : > { %p4926_p8 = pnand %p4925_p7, %p4924_p6 }
  0x10   : > { %p4927_p9 = pneg %p4926_p8 }
  0x12   : > { %p4932_p11 = pnand %p4930_p10, %p4927_p9 }
  0x14   : > { %4935 = shalt.err (!%p4932_p11)
}
  0x15   : > { %s4936_s27 = scalar_lea.vmem %s127_s15, 55296  ;;  %p4944_p1 = scmp.lt.s32.totalorder %s127_s15, %s127_s15 }
  0x16   : > { %p4937_p12 = scmp.ne.s32.totalorder %s127_s15, %s4936_s27  ;;  %p4945_p4 = scmp.lt.s32.totalorder %s4936_s27, %s4936_s27 }
  0x18   : > { %p4939_p13 = pnand %p4937_p12, %p4925_p7  ;;  %p4946_p3 = por %p4945_p4, %p4944_p1 }
  0x1a   : > { %p4940_p0 = pneg %p4939_p13 }
  0x1c   : > { %p4947_p2 = pnand %p4946_p3, %p4940_p0 }
  0x1e   : > { %4950 = shalt.err (!%p4947_p2)
}
  0x1f   : > { %s4997_s28 = smov 256   ;;  %s4998_s29 = smov 16  }
  0x20   : > { %4233 = dma.hbm_to_vmem [thread:$0]  (!%p5039_p5), %s5249_s1, 55296, %s127_s15, [#allocation3], %s4997_s28, %s4997_s28, %s4998_s29  }
  0x21   : > { %s4951_s7 = scalar_lea.hbm %s5250_s2, 64 }
  0x22   : > { %p4952_p6 = scmp.ne.s32.totalorder %s5250_s2, %s4951_s7  ;;  %p4958_p8 = scmp.lt.u32.totalorder %s4951_s7, %s5250_s2 }
  0x24   : > { %p4954_p2 = pnand %p4952_p6, %p4925_p7 }
  0x26   : > { %p4955_p3 = pneg %p4954_p2 }
  0x28   : > { %p4960_p9 = pnand %p4958_p8, %p4955_p3 }
  0x2a   : > { %4963 = shalt.err (!%p4960_p9)
}
  0x2b   : > { %s4964_s14 = scalar_lea.vmem %s5043_s18, 64  ;;  %p4972_p13 = scmp.lt.s32.totalorder %s5043_s18, %s5043_s18 }
  0x2c   : > { %p4965_p10 = scmp.ne.s32.totalorder %s5043_s18, %s4964_s14  ;;  %p4973_p0 = scmp.lt.s32.totalorder %s4964_s14, %s4964_s14 }
  0x2e   : > { %p4967_p11 = pnand %p4965_p10, %p4925_p7  ;;  %p4974_p1 = por %p4973_p0, %p4972_p13 }
  0x30   : > { %p4968_p12 = pneg %p4967_p11 }
  0x32   : > { %p4975_p4 = pnand %p4974_p1, %p4968_p12 }
  0x34   : > { %4978 = shalt.err (!%p4975_p4)
}
  0x35   : > { %4236 = dma.hbm_to_vmem [thread:$0]  (!%p5039_p5), %s5250_s2, 64, %s5043_s18, [#allocation5]  }
  0x36   : > { %p5256_p6 = scmp.ne.s32.totalorder %s5254_s16, 0 }
  0x37   : > { %p5257_p2 = scmp.eq.s32.totalorder (!%p5256_p6), %s5026_s13, 0 }
  0x38   : > { %161 = sbr.rel (%p5256_p6) target bundleno = 722 (0x2d2), region = 32 }
  0x3f   : > { %4984 = dma.done.wait (%p5257_p2), [#allocation3], 55296   ;;  %p5258_p7 = pmov %p5257_p2 }
  0x40   : > { %p5259_p3 = pmov %p5257_p2 }
  0x41   : > { %4986 = vsyncadd (%p5258_p7), [#allocation3], 4294912000 }
  0x42   : > { %4988 = dma.done.wait (%p5259_p3), [#allocation5], 64   ;;  %p5260_p8 = pmov %p5257_p2 }
  0x43   : > { %v4254_v0 = vld [vmem:[#allocation2 + $0x484] ss:$16 sps:$4 sm:$0xff]   ;;  %v4258_v2 = vld [vmem:[#allocation2 + $0x480] ss:$16 sps:$4 sm:$0xff]   ;;  %p189_p5 = scmp.lt.s32.totalorder %s5026_s13, 3  ;;  %vm1275_vm0 = vcmask 523264  }
  0x44   : > { %4990 = vsyncadd (%p5260_p8), [#allocation5], 4294967232  ;;  %v4256_v1 = vld [vmem:[#allocation2 + $0x684] ss:$16 sps:$4 sm:$0xff]   ;;  %1279 = vmatprep.subr.bf16.mxu0 %v4254_v0  ;;  %v4259_v3 = vld [vmem:[#allocation2 + $0x680] ss:$16 sps:$4 sm:$0xff]  }
  0x45   : > { %1320 = vmatprep.subr.bf16.mxu1 %v4256_v1  ;;  %v4260_v4 = vld [vmem:[#allocation2 + $0x4a4] ss:$16 sps:$4 sm:$0xff]   ;;  %1280 = vmatpush1.bf16.msra.mxu0 %v4258_v2  ;;  %v4264_v6 = vld [vmem:[#allocation2 + $0x4a0] ss:$16 sps:$4 sm:$0xff]   ;;  %s5262_s13 = smov (!%p189_p5, %s5026_s13), 3 }
  0x46   : > { %1321 = vmatpush1.bf16.msra.mxu1 %v4259_v3  ;;  %v4262_v5 = vld [vmem:[#allocation2 + $0x6a4] ss:$16 sps:$4 sm:$0xff]   ;;  %1281 = vmatprep.subr.bf16.mxu0 %v4260_v4  ;;  %v4265_v7 = vld [vmem:[#allocation2 + $0x6a0] ss:$16 sps:$4 sm:$0xff]   ;;  %s4221_s16 = smul.u32 40, %s5262_s13  ;;  %s4220_s21 = sshll.u32 %s5262_s13, 5 }
  0x47   : > { %1322 = vmatprep.subr.bf16.mxu1 %v4262_v5  ;;  %v4266_v8 = vld [vmem:[#allocation2 + $0x4c4] ss:$16 sps:$4 sm:$0xff]   ;;  %v4270_v10 = vld [vmem:[#allocation2 + $0x4c0] ss:$16 sps:$4 sm:$0xff]   ;;  %s5239_s24 = scalar_lea.vmem %s5251_s3, %s4220_s21 }
  0x48   : > { %v4268_v9 = vld [vmem:[#allocation2 + $0x6c4] ss:$16 sps:$4 sm:$0xff]   ;;  %v4271_v11 = vld [vmem:[#allocation2 + $0x6c0] ss:$16 sps:$4 sm:$0xff]   ;;  %s5110_s20 = scalar_lea.vmem %s5248_s0, %s4221_s16 }
  0x49   : > { %1282 = vmatpush1.bf16.msra.mxu0 %v4264_v6  ;;  %v4272_v12 = vld [vmem:[#allocation2 + $0x4e4] ss:$16 sps:$4 sm:$0xff]   ;;  %v4276_v14 = vld [vmem:[#allocation2 + $0x4e0] ss:$16 sps:$4 sm:$0xff]   ;;  %v5117_v50 = vld [vmem:[%s5110_s20 + $0x8] sm:$0xff] }
  0x4a   : > { %1323 = vmatpush1.bf16.msra.mxu1 %v4265_v7  ;;  %1283 = vmatprep.subr.bf16.mxu0 %v4266_v8  ;;  %v4274_v13 = vld [vmem:[#allocation2 + $0x6e4] ss:$16 sps:$4 sm:$0xff]   ;;  %v4277_v15 = vld [vmem:[#allocation2 + $0x6e0] ss:$16 sps:$4 sm:$0xff]  }
  0x4b   : > { %1324 = vmatprep.subr.bf16.mxu1 %v4268_v9  ;;  %v4278_v16 = vld [vmem:[#allocation2 + $0x504] ss:$16 sps:$4 sm:$0xff]   ;;  %v4282_v18 = vld [vmem:[#allocation2 + $0x500] ss:$16 sps:$4 sm:$0xff]  }
  0x4c   : > { %v4280_v17 = vld [vmem:[#allocation2 + $0x704] ss:$16 sps:$4 sm:$0xff]   ;;  %v4283_v19 = vld [vmem:[#allocation2 + $0x700] ss:$16 sps:$4 sm:$0xff]  }
  0x4d   : > { %1284 = vmatpush1.bf16.msra.mxu0 %v4270_v10  ;;  %v4284_v20 = vld [vmem:[#allocation2 + $0x524] ss:$16 sps:$4 sm:$0xff]   ;;  %v4288_v22 = vld [vmem:[#allocation2 + $0x520] ss:$16 sps:$4 sm:$0xff]  }
  0x4e   : > { %1325 = vmatpush1.bf16.msra.mxu1 %v4271_v11  ;;  %1285 = vmatprep.subr.bf16.mxu0 %v4272_v12  ;;  %v4286_v21 = vld [vmem:[#allocation2 + $0x724] ss:$16 sps:$4 sm:$0xff]   ;;  %v4289_v23 = vld [vmem:[#allocation2 + $0x720] ss:$16 sps:$4 sm:$0xff]  }
  0x4f   : > { %1326 = vmatprep.subr.bf16.mxu1 %v4274_v13  ;;  %v4290_v24 = vld [vmem:[#allocation2 + $0x544] ss:$16 sps:$4 sm:$0xff]   ;;  %v4294_v26 = vld [vmem:[#allocation2 + $0x540] ss:$16 sps:$4 sm:$0xff]  }
  0x50   : > { %v4292_v25 = vld [vmem:[#allocation2 + $0x744] ss:$16 sps:$4 sm:$0xff]   ;;  %v4295_v27 = vld [vmem:[#allocation2 + $0x740] ss:$16 sps:$4 sm:$0xff]  }
  0x51   : > { %1286 = vmatpush1.bf16.msra.mxu0 %v4276_v14  ;;  %v4296_v28 = vld [vmem:[#allocation2 + $0x564] ss:$16 sps:$4 sm:$0xff]   ;;  %v4300_v30 = vld [vmem:[#allocation2 + $0x560] ss:$16 sps:$4 sm:$0xff]  }
  0x52   : > { %1327 = vmatpush1.bf16.msra.mxu1 %v4277_v15  ;;  %1287 = vmatprep.subr.bf16.mxu0 %v4278_v16  ;;  %v4298_v29 = vld [vmem:[#allocation2 + $0x764] ss:$16 sps:$4 sm:$0xff]   ;;  %v4301_v31 = vld [vmem:[#allocation2 + $0x760] ss:$16 sps:$4 sm:$0xff]  }
  0x53   : > { %1328 = vmatprep.subr.bf16.mxu1 %v4280_v17  ;;  %v4302_v32 = vld [vmem:[#allocation2 + $0x584] ss:$16 sps:$4 sm:$0xff]   ;;  %v4306_v34 = vld [vmem:[#allocation2 + $0x580] ss:$16 sps:$4 sm:$0xff]  }
  0x54   : > { %v4304_v33 = vld [vmem:[#allocation2 + $0x784] ss:$16 sps:$4 sm:$0xff]   ;;  %v4307_v35 = vld [vmem:[#allocation2 + $0x780] ss:$16 sps:$4 sm:$0xff]  }
  0x55   : > { %1288 = vmatpush1.bf16.msra.mxu0 %v4282_v18  ;;  %v4308_v36 = vld [vmem:[#allocation2 + $0x5a4] ss:$16 sps:$4 sm:$0xff]   ;;  %v4312_v38 = vld [vmem:[#allocation2 + $0x5a0] ss:$16 sps:$4 sm:$0xff]  }
  0x56   : > { %1329 = vmatpush1.bf16.msra.mxu1 %v4283_v19  ;;  %1289 = vmatprep.subr.bf16.mxu0 %v4284_v20  ;;  %v4310_v37 = vld [vmem:[#allocation2 + $0x7a4] ss:$16 sps:$4 sm:$0xff]   ;;  %v4313_v39 = vld [vmem:[#allocation2 + $0x7a0] ss:$16 sps:$4 sm:$0xff]  }
  0x57   : > { %1330 = vmatprep.subr.bf16.mxu1 %v4286_v21  ;;  %v4314_v40 = vld [vmem:[#allocation2 + $0x5c4] ss:$16 sps:$4 sm:$0xff]   ;;  %v4318_v42 = vld [vmem:[#allocation2 + $0x5c0] ss:$16 sps:$4 sm:$0xff]  }
  0x58   : > { %v4316_v41 = vld [vmem:[#allocation2 + $0x7c4] ss:$16 sps:$4 sm:$0xff]   ;;  %v4319_v43 = vld [vmem:[#allocation2 + $0x7c0] ss:$16 sps:$4 sm:$0xff]  }
  0x59   : > { %1290 = vmatpush1.bf16.msra.mxu0 %v4288_v22  ;;  %v4320_v44 = vld [vmem:[#allocation2 + $0x5e4] ss:$16 sps:$4 sm:$0xff]   ;;  %v4324_v46 = vld [vmem:[#allocation2 + $0x5e0] ss:$16 sps:$4 sm:$0xff]  }
  0x5a   : > { %1331 = vmatpush1.bf16.msra.mxu1 %v4289_v23  ;;  %1291 = vmatprep.subr.bf16.mxu0 %v4290_v24  ;;  %v4322_v45 = vld [vmem:[#allocation2 + $0x7e4] ss:$16 sps:$4 sm:$0xff]   ;;  %v4325_v47 = vld [vmem:[#allocation2 + $0x7e0] ss:$16 sps:$4 sm:$0xff]   ;;  %v4359_v23 = vld [vmem:[#allocation2 + $0x48c] ss:$16 sps:$4 sm:$0xff]  }
  0x5b   : > { %1332 = vmatprep.subr.bf16.mxu1 %v4292_v25  ;;  %v5113_v48 = vld [vmem:[%s5110_s20] sm:$0xff]  ;;  %v347_v49 = vld [vmem:[%s5110_s20 + $0x14] sm:$0x11] }
  0x5c   : > { %v348_v51 = vld [vmem:[%s5110_s20 + $0x1c] sm:$0x11]  ;;  %v4326_v52 = vld [vmem:[#allocation2 + $0x604] ss:$16 sps:$4 sm:$0xff]   ;;  %v3766_v53 = vcombine.high %v5113_v48, %v347_v49  ;;  %v3765_v6 = vcombine.low %v5113_v48, %v347_v49 }
  0x5d   : > { %1292 = vmatpush1.bf16.msra.mxu0 %v4294_v26  ;;  %v3768_v54 = vcombine.high %v5117_v50, %v348_v51  ;;  %v4328_v55 = vld [vmem:[#allocation2 + $0x804] ss:$16 sps:$4 sm:$0xff]   ;;  %v4330_v60 = vld [vmem:[#allocation2 + $0x600] ss:$16 sps:$4 sm:$0xff]   ;;  %v3767_v7 = vcombine.low %v5117_v50, %v348_v51  ;;  %v4384_v49 = vld [vmem:[#allocation2 + $0x68c] ss:$16 sps:$4 sm:$0xff]  }
  0x5e   : > { %1333 = vmatpush1.bf16.msra.mxu1 %v4295_v27  ;;  %1293 = vmatprep.subr.bf16.mxu0 %v4296_v28  ;;  %v524_v56 = vshrl.u32 %v3766_v53, 16  ;;  %v526_v57 = vshll.u32 %v3766_v53, 16  ;;  %v4331_v61 = vld [vmem:[#allocation2 + $0x800] ss:$16 sps:$4 sm:$0xff]   ;;  %v4332_v62 = vld [vmem:[#allocation2 + $0x624] ss:$16 sps:$4 sm:$0xff]  }
  0x5f   : > { %1334 = vmatprep.subr.bf16.mxu1 %v4298_v29  ;;  %v538_v58 = vshrl.u32 %v3768_v54, 16  ;;  %v540_v59 = vshll.u32 %v3768_v54, 16  ;;  %v4334_v1 = vld [vmem:[#allocation2 + $0x824] ss:$16 sps:$4 sm:$0xff]   ;;  %v4336_v4 = vld [vmem:[#allocation2 + $0x620] ss:$16 sps:$4 sm:$0xff]  }
  0x60   : > { %v528_v63 = vrot.slane %v526_v57, 1  ;;  %v4337_v5 = vld [vmem:[#allocation2 + $0x820] ss:$16 sps:$4 sm:$0xff]   ;;  %v4338_v8 = vld [vmem:[#allocation2 + $0x644] ss:$16 sps:$4 sm:$0xff]   ;;  %v519_v10 = vshll.u32 %v3765_v6, 16 }
  0x61   : > { %1294 = vmatpush1.bf16.msra.mxu0 %v4300_v30  ;;  %v542_v0 = vrot.slane %v540_v59, 1  ;;  %v4340_v9 = vld [vmem:[#allocation2 + $0x844] ss:$16 sps:$4 sm:$0xff]   ;;  %v533_v11 = vshll.u32 %v3767_v7, 16  ;;  %v4342_v12 = vld [vmem:[#allocation2 + $0x640] ss:$16 sps:$4 sm:$0xff]  }
  0x62   : > { %1335 = vmatpush1.bf16.msra.mxu1 %v4301_v31  ;;  %1295 = vmatprep.subr.bf16.mxu0 %v4302_v32  ;;  %v529_v2 = vor.u32 %v528_v63, %v524_v56  ;;  %v4343_v13 = vld [vmem:[#allocation2 + $0x840] ss:$16 sps:$4 sm:$0xff]   ;;  %v4344_v14 = vld [vmem:[#allocation2 + $0x664] ss:$16 sps:$4 sm:$0xff]   ;;  %v517_v16 = vshrl.u32 %v3765_v6, 16  ;;  %v521_v17 = vrot.slane %v519_v10, 1 }
  0x63   : > { %1336 = vmatprep.subr.bf16.mxu1 %v4304_v33  ;;  %v5122_v3 = vor.u32 %v542_v0, %v538_v58  ;;  %v4346_v15 = vld [vmem:[#allocation2 + $0x864] ss:$16 sps:$4 sm:$0xff]   ;;  %v531_v18 = vshrl.u32 %v3767_v7, 16  ;;  %v535_v19 = vrot.slane %v533_v11, 1  ;;  %v4348_v20 = vld [vmem:[#allocation2 + $0x660] ss:$16 sps:$4 sm:$0xff]  }
  0x64   : > { %1311 = vmatprep.mubr.bf16.mxu0 %v529_v2  ;;  %v4349_v21 = vld [vmem:[#allocation2 + $0x860] ss:$16 sps:$4 sm:$0xff]   ;;  %v4356_v22 = vld [vmem:[#allocation2 + $0x884] ss:$16 sps:$4 sm:$0xff]   ;;  %v5127_v25 = vor.u32 %v521_v17, %v517_v16  ;;  %v4357_v27 = vld [vmem:[#allocation2 + $0x488] ss:$16 sps:$4 sm:$0xff]  }
  0x65   : > { %1296 = vmatpush1.bf16.msra.mxu0 %v4306_v34  ;;  %1352 = vmatprep.mubr.bf16.mxu1 %v5122_v3  ;;  %v4354_v24 = vld [vmem:[#allocation2 + $0x880] ss:$16 sps:$4 sm:$0xff]   ;;  %v5129_v26 = vor.u32 %v535_v19, %v531_v18  ;;  %v349_v29 = vld [vmem:[%s5110_s20 + $0x24] sm:$0x1]  ;;  %v4365_v31 = vld [vmem:[#allocation2 + $0x4ac] ss:$16 sps:$4 sm:$0xff]  }
  0x66   : > { %1337 = vmatpush1.bf16.msra.mxu1 %v4307_v35  ;;  %1297 = vmatprep.subr.bf16.mxu0 %v4308_v36  ;;  %v202_v28 = vld [vmem:[%s5110_s20 + $0x10] sm:$0xf]  ;;  %v4362_v30 = vld [vmem:[#allocation2 + $0x8a4] ss:$16 sps:$4 sm:$0xff]   ;;  %v4363_v34 = vld [vmem:[#allocation2 + $0x4a8] ss:$16 sps:$4 sm:$0xff]  }
  0x67   : > { %1338 = vmatprep.subr.bf16.mxu1 %v4310_v37  ;;  %v3769_v32 = vcombine.low %v202_v28, %v349_v29  ;;  %v4360_v33 = vld [vmem:[#allocation2 + $0x8a0] ss:$16 sps:$4 sm:$0xff]   ;;  %v4368_v35 = vld [vmem:[#allocation2 + $0x8c4] ss:$16 sps:$4 sm:$0xff]   ;;  %v4371_v36 = vld [vmem:[#allocation2 + $0x4cc] ss:$16 sps:$4 sm:$0xff]  }
  0x68   : > { %v4999_v37 = vmov 0   ;;  %v4382_v53 = vld [vmem:[#allocation2 + $0x688] ss:$16 sps:$4 sm:$0xff]   ;;  %v4387_v54 = vld [vmem:[#allocation2 + $0x52c] ss:$16 sps:$4 sm:$0xff]  }
  0x69   : > { %1298 = vmatpush1.bf16.msra.mxu0 %v4312_v38  ;;  %v547_v38 = vshll.u32 %v3769_v32, 16  ;;  %v4385_v56 = vld [vmem:[#allocation2 + $0x528] ss:$16 sps:$4 sm:$0xff]   ;;  %v4393_v58 = vld [vmem:[#allocation2 + $0x54c] ss:$16 sps:$4 sm:$0xff]  }
  0x6a   : > { %1339 = vmatpush1.bf16.msra.mxu1 %v4313_v39  ;;  %1299 = vmatprep.subr.bf16.mxu0 %v4314_v40  ;;  %v4366_v39 = vld [vmem:[#allocation2 + $0x8c0] ss:$16 sps:$4 sm:$0xff]   ;;  %v4369_v40 = vld [vmem:[#allocation2 + $0x4c8] ss:$16 sps:$4 sm:$0xff]   ;;  %v4396_v59 = vld [vmem:[#allocation2 + $0x6cc] ss:$16 sps:$4 sm:$0xff]  }
  0x6b   : > { %1340 = vmatprep.subr.bf16.mxu1 %v4316_v41  ;;  %v4374_v41 = vld [vmem:[#allocation2 + $0x8e4] ss:$16 sps:$4 sm:$0xff]   ;;  %v4388_v57 = vld [vmem:[#allocation2 + $0x6a8] ss:$16 sps:$4 sm:$0xff]   ;;  %v4402_v63 = vld [vmem:[#allocation2 + $0x6ec] ss:$16 sps:$4 sm:$0xff]  }
  0x6c   : > { %v4397_v0 = vld [vmem:[#allocation2 + $0x568] ss:$16 sps:$4 sm:$0xff]   ;;  %v4411_v6 = vld [vmem:[#allocation2 + $0x5ac] ss:$16 sps:$4 sm:$0xff]  }
  0x6d   : > { %1300 = vmatpush1.bf16.msra.mxu0 %v4318_v42  ;;  %v4377_v42 = vld [vmem:[#allocation2 + $0x4ec] ss:$16 sps:$4 sm:$0xff]   ;;  %v4421_v16 = vld [vmem:[#allocation2 + $0x5e8] ss:$16 sps:$4 sm:$0xff]  }
  0x6e   : > { %1341 = vmatpush1.bf16.msra.mxu1 %v4319_v43  ;;  %1301 = vmatprep.subr.bf16.mxu0 %v4320_v44  ;;  %v545_v43 = vshrl.u32 %v3769_v32, 16  ;;  %v549_v44 = vrot.slane %v547_v38, 1  ;;  %v4414_v7 = vld [vmem:[#allocation2 + $0x72c] ss:$16 sps:$4 sm:$0xff]   ;;  %v4424_v17 = vld [vmem:[#allocation2 + $0x768] ss:$16 sps:$4 sm:$0xff]  }
  0x6f   : > { %1342 = vmatprep.subr.bf16.mxu1 %v4322_v45  ;;  %v4372_v45 = vld [vmem:[#allocation2 + $0x8e0] ss:$16 sps:$4 sm:$0xff]   ;;  %v4417_v10 = vld [vmem:[#allocation2 + $0x5cc] ss:$16 sps:$4 sm:$0xff]  }
  0x70   : > { %v5136_v51 = vor.u32 %v549_v44, %v545_v43  ;;  %v4420_v11 = vld [vmem:[#allocation2 + $0x74c] ss:$16 sps:$4 sm:$0xff]   ;;  %v4457_v43 = vld [vmem:[#allocation2 + $0x828] ss:$16 sps:$4 sm:$0xff]  }
  0x71   : > { %1302 = vmatpush1.bf16.msra.mxu0 %v4324_v46  ;;  %v4375_v46 = vld [vmem:[#allocation2 + $0x4e8] ss:$16 sps:$4 sm:$0xff]   ;;  %v4429_v18 = vld [vmem:[#allocation2 + $0x60c] ss:$16 sps:$4 sm:$0xff]  }
  0x72   : > { %1343 = vmatpush1.bf16.msra.mxu1 %v4325_v47  ;;  %1303 = vmatprep.subr.bf16.mxu0 %v4326_v52  ;;  %v4381_v47 = vld [vmem:[#allocation2 + $0x50c] ss:$16 sps:$4 sm:$0xff]   ;;  %v4379_v52 = vld [vmem:[#allocation2 + $0x508] ss:$16 sps:$4 sm:$0xff]  }
  0x73   : > { %1344 = vmatprep.subr.bf16.mxu1 %v4328_v55  ;;  %v4390_v55 = vld [vmem:[#allocation2 + $0x6ac] ss:$16 sps:$4 sm:$0xff]   ;;  %v4460_v44 = vld [vmem:[#allocation2 + $0x8a8] ss:$16 sps:$4 sm:$0xff]  }
  0x74   : > { %v4432_v19 = vld [vmem:[#allocation2 + $0x78c] ss:$16 sps:$4 sm:$0xff]  }
  0x75   : > { %1304 = vmatpush1.bf16.msra.mxu0 %v4330_v60  ;;  %v4391_v60 = vld [vmem:[#allocation2 + $0x548] ss:$16 sps:$4 sm:$0xff]   ;;  %v4441_v28 = vld [vmem:[#allocation2 + $0x64c] ss:$16 sps:$4 sm:$0xff]  }
  0x76   : > { %1345 = vmatpush1.bf16.msra.mxu1 %v4331_v61  ;;  %1305 = vmatprep.subr.bf16.mxu0 %v4332_v62  ;;  %v4394_v61 = vld [vmem:[#allocation2 + $0x6c8] ss:$16 sps:$4 sm:$0xff]   ;;  %v4399_v62 = vld [vmem:[#allocation2 + $0x56c] ss:$16 sps:$4 sm:$0xff]  }
  0x77   : > { %1346 = vmatprep.subr.bf16.mxu1 %v4334_v1  ;;  %v4400_v1 = vld [vmem:[#allocation2 + $0x6e8] ss:$16 sps:$4 sm:$0xff]   ;;  %v4444_v29 = vld [vmem:[#allocation2 + $0x7cc] ss:$16 sps:$4 sm:$0xff]  }
  0x78   : > { %v4447_v32 = vld [vmem:[#allocation2 + $0x66c] ss:$16 sps:$4 sm:$0xff]  }
  0x79   : > { %1306 = vmatpush1.bf16.msra.mxu0 %v4336_v4  ;;  %v4408_v4 = vld [vmem:[#allocation2 + $0x70c] ss:$16 sps:$4 sm:$0xff]  }
  0x7a   : > { %1347 = vmatpush1.bf16.msra.mxu1 %v4337_v5  ;;  %1307 = vmatprep.subr.bf16.mxu0 %v4338_v8  ;;  %v4403_v5 = vld [vmem:[#allocation2 + $0x588] ss:$16 sps:$4 sm:$0xff]   ;;  %v4456_v38 = vld [vmem:[#allocation2 + $0x88c] ss:$16 sps:$4 sm:$0xff]  }
  0x7b   : > { %1348 = vmatprep.subr.bf16.mxu1 %v4340_v9  ;;  %v4409_v8 = vld [vmem:[#allocation2 + $0x5a8] ss:$16 sps:$4 sm:$0xff]  }
  0x7c   : > { %v4412_v9 = vld [vmem:[#allocation2 + $0x728] ss:$16 sps:$4 sm:$0xff]  }
  0x7d   : > { %1308 = vmatpush1.bf16.msra.mxu0 %v4342_v12  ;;  %v4415_v12 = vld [vmem:[#allocation2 + $0x5c8] ss:$16 sps:$4 sm:$0xff]  }
  0x7e   : > { %1349 = vmatpush1.bf16.msra.mxu1 %v4343_v13  ;;  %1309 = vmatprep.subr.bf16.mxu0 %v4344_v14  ;;  %v4418_v13 = vld [vmem:[#allocation2 + $0x748] ss:$16 sps:$4 sm:$0xff]   ;;  %v4423_v14 = vld [vmem:[#allocation2 + $0x5ec] ss:$16 sps:$4 sm:$0xff]  }
  0x7f   : > { %1350 = vmatprep.subr.bf16.mxu1 %v4346_v15  ;;  %v4426_v15 = vld [vmem:[#allocation2 + $0x76c] ss:$16 sps:$4 sm:$0xff]  }
  0x81   : > { %1310 = vmatpush1.bf16.msra.mxu0 %v4348_v20  ;;  %v4427_v20 = vld [vmem:[#allocation2 + $0x608] ss:$16 sps:$4 sm:$0xff]  }
  0x82   : > { %1351 = vmatpush1.bf16.msra.mxu1 %v4349_v21  ;;  %1361 = vmatprep.subr.bf16.mxu0 %v4356_v22  ;;  %v4430_v21 = vld [vmem:[#allocation2 + $0x788] ss:$16 sps:$4 sm:$0xff]   ;;  %v4435_v22 = vld [vmem:[#allocation2 + $0x62c] ss:$16 sps:$4 sm:$0xff]  }
  0x83   : > { %1402 = vmatprep.subr.bf16.mxu1 %v4359_v23  ;;  %v4438_v23 = vld [vmem:[#allocation2 + $0x7ac] ss:$16 sps:$4 sm:$0xff]  }
  0x84   : > { %1312 = vmatmul.mubr.bf16.vlgmr.msra.gmra.mrb[0].mxu0 %v5127_v25 }
  0x85   : > { %1353 = vmatmul.mubr.bf16.vlgmr.msra.gmra.mrb[0].mxu1 %v5129_v26  ;;  %1362 = vmatpush1.bf16.msra.mxu0 %v4354_v24  ;;  %v4433_v24 = vld [vmem:[#allocation2 + $0x628] ss:$16 sps:$4 sm:$0xff]  }
  0x86   : > { %1403 = vmatpush1.bf16.msra.mxu1 %v4357_v27  ;;  %1363 = vmatprep.subr.bf16.mxu0 %v4362_v30  ;;  %v4436_v27 = vld [vmem:[#allocation2 + $0x7a8] ss:$16 sps:$4 sm:$0xff]  }
  0x87   : > { %1404 = vmatprep.subr.bf16.mxu1 %v4365_v31  ;;  %1393 = vmatprep.mubr.bf16.mxu0 %v4999_v37  ;;  %v4439_v30 = vld [vmem:[#allocation2 + $0x648] ss:$16 sps:$4 sm:$0xff]  }
  0x88   : > { %1434 = vmatprep.mubr.bf16.mxu1 %v529_v2  ;;  %v4405_v2 = vld [vmem:[#allocation2 + $0x58c] ss:$16 sps:$4 sm:$0xff]   ;;  %v4442_v31 = vld [vmem:[#allocation2 + $0x7c8] ss:$16 sps:$4 sm:$0xff]  }
  0x89   : > { %1364 = vmatpush1.bf16.msra.mxu0 %v4360_v33  ;;  %v4450_v33 = vld [vmem:[#allocation2 + $0x7ec] ss:$16 sps:$4 sm:$0xff]  }
  0x8a   : > { %1405 = vmatpush1.bf16.msra.mxu1 %v4363_v34  ;;  %1365 = vmatprep.subr.bf16.mxu0 %v4368_v35  ;;  %v4445_v34 = vld [vmem:[#allocation2 + $0x668] ss:$16 sps:$4 sm:$0xff]  }
  0x8b   : > { %1406 = vmatprep.subr.bf16.mxu1 %v4371_v36  ;;  %v4448_v35 = vld [vmem:[#allocation2 + $0x7e8] ss:$16 sps:$4 sm:$0xff]   ;;  %v4453_v36 = vld [vmem:[#allocation2 + $0x80c] ss:$16 sps:$4 sm:$0xff]  }
  0x8d   : > { %1366 = vmatpush1.bf16.msra.mxu0 %v4366_v39  ;;  %v4451_v39 = vld [vmem:[#allocation2 + $0x808] ss:$16 sps:$4 sm:$0xff]  }
  0x8e   : > { %1407 = vmatpush1.bf16.msra.mxu1 %v4369_v40  ;;  %1367 = vmatprep.subr.bf16.mxu0 %v4374_v41  ;;  %v4454_v40 = vld [vmem:[#allocation2 + $0x888] ss:$16 sps:$4 sm:$0xff]   ;;  %v4459_v41 = vld [vmem:[#allocation2 + $0x82c] ss:$16 sps:$4 sm:$0xff]  }
  0x8f   : > { %1408 = vmatprep.subr.bf16.mxu1 %v4377_v42  ;;  %v4462_v42 = vld [vmem:[#allocation2 + $0x8ac] ss:$16 sps:$4 sm:$0xff]  }
  0x91   : > { %1368 = vmatpush1.bf16.msra.mxu0 %v4372_v45  ;;  %v4465_v45 = vld [vmem:[#allocation2 + $0x84c] ss:$16 sps:$4 sm:$0xff]  }
  0x92   : > { %1409 = vmatpush1.bf16.msra.mxu1 %v4375_v46  ;;  %1443 = vmatprep.subr.bf16.mxu0 %v4384_v49  ;;  %v4468_v46 = vld [vmem:[#allocation2 + $0x8cc] ss:$16 sps:$4 sm:$0xff]   ;;  %v4466_v49 = vld [vmem:[#allocation2 + $0x8c8] ss:$16 sps:$4 sm:$0xff]  }
  0x93   : > { %1410 = vmatprep.subr.bf16.mxu1 %v4381_v47  ;;  %v4463_v47 = vld [vmem:[#allocation2 + $0x848] ss:$16 sps:$4 sm:$0xff]  }
  0x94   : > { %3914 = vmatmul.mubr.msk.bf16.vlgmr.msra.gmra.mrb[4].mxu0 %vm1275_vm0, %v5136_v51 }
  0x95   : > { %1444 = vmatpush1.bf16.msra.mxu0 %v4382_v53  ;;  %1475 = vmatprep.mubr.bf16.mxu0 %v5122_v3  ;;  %v4406_v3 = vld [vmem:[#allocation2 + $0x708] ss:$16 sps:$4 sm:$0xff]   ;;  %v4474_v53 = vld [vmem:[#allocation2 + $0x8ec] ss:$16 sps:$4 sm:$0xff]  }
  0x96   : > { %1411 = vmatpush1.bf16.msra.mxu1 %v4379_v52  ;;  %1445 = vmatprep.subr.bf16.mxu0 %v4390_v55  ;;  %v4471_v52 = vld [vmem:[#allocation2 + $0x86c] ss:$16 sps:$4 sm:$0xff]   ;;  %v4477_v55 = vld [vmem:[#allocation2 + $0x4] ss:$16 sps:$4 sm:$0xff]  }
  0x97   : > { %1412 = vmatprep.subr.bf16.mxu1 %v4387_v54  ;;  %v4472_v54 = vld [vmem:[#allocation2 + $0x8e8] ss:$16 sps:$4 sm:$0xff]  }
  0x99   : > { %1446 = vmatpush1.bf16.msra.mxu0 %v4388_v57  ;;  %v4475_v57 = vld [vmem:[#allocation2] ss:$16 sps:$4 sm:$0xff]  }
  0x9a   : > { %1413 = vmatpush1.bf16.msra.mxu1 %v4385_v56  ;;  %1447 = vmatprep.subr.bf16.mxu0 %v4396_v59  ;;  %v4480_v56 = vld [vmem:[#allocation2 + $0x204] ss:$16 sps:$4 sm:$0xff]  }
  0x9b   : > { %1414 = vmatprep.subr.bf16.mxu1 %v4393_v58  ;;  %v4478_v58 = vld [vmem:[#allocation2 + $0x200] ss:$16 sps:$4 sm:$0xff]   ;;  %v4483_v59 = vld [vmem:[#allocation2 + $0x24] ss:$16 sps:$4 sm:$0xff]  }
  0x9d   : > { %1448 = vmatpush1.bf16.msra.mxu0 %v4394_v61  ;;  %v5145_v61 = vcombine.high %v5113_v48, %v5113_v48  ;;  %v4487_v48 = vld [vmem:[#allocation2 + $0x40] ss:$16 sps:$4 sm:$0xff]  }
  0x9e   : > { %1415 = vmatpush1.bf16.msra.mxu1 %v4391_v60  ;;  %1449 = vmatprep.subr.bf16.mxu0 %v4402_v63  ;;  %v4486_v60 = vld [vmem:[#allocation2 + $0x224] ss:$16 sps:$4 sm:$0xff]   ;;  %v4481_v63 = vld [vmem:[#allocation2 + $0x20] ss:$16 sps:$4 sm:$0xff]  }
  0x9f   : > { %1416 = vmatprep.subr.bf16.mxu1 %v4399_v62  ;;  %v5149_v62 = vcombine.high %v5117_v50, %v5117_v50  ;;  %v4490_v50 = vld [vmem:[#allocation2 + $0x240] ss:$16 sps:$4 sm:$0xff]  }
  0xa1   : > { %1450 = vmatpush1.bf16.msra.mxu0 %v4400_v1  ;;  %v4489_v1 = vld [vmem:[#allocation2 + $0x44] ss:$16 sps:$4 sm:$0xff]  }
  0xa2   : > { %1417 = vmatpush1.bf16.msra.mxu1 %v4397_v0  ;;  %1451 = vmatprep.subr.bf16.mxu0 %v4408_v4  ;;  %v4484_v0 = vld [vmem:[#allocation2 + $0x220] ss:$16 sps:$4 sm:$0xff]  }
  0xa3   : > { %1418 = vmatprep.subr.bf16.mxu1 %v4405_v2  ;;  %v4492_v2 = vld [vmem:[#allocation2 + $0x244] ss:$16 sps:$4 sm:$0xff]   ;;  %v4493_v4 = vld [vmem:[#allocation2 + $0x60] ss:$16 sps:$4 sm:$0xff]  }
  0xa5   : > { %1452 = vmatpush1.bf16.msra.mxu0 %v4406_v3  ;;  %v4501_v3 = vld [vmem:[#allocation2 + $0x84] ss:$16 sps:$4 sm:$0xff]  }
  0xa6   : > { %1419 = vmatpush1.bf16.msra.mxu1 %v4403_v5  ;;  %1453 = vmatprep.subr.bf16.mxu0 %v4414_v7  ;;  %v4496_v5 = vld [vmem:[#allocation2 + $0x260] ss:$16 sps:$4 sm:$0xff]  }
  0xa7   : > { %1420 = vmatprep.subr.bf16.mxu1 %v4411_v6  ;;  %v4504_v6 = vld [vmem:[#allocation2 + $0x284] ss:$16 sps:$4 sm:$0xff]   ;;  %v4499_v7 = vld [vmem:[#allocation2 + $0x80] ss:$16 sps:$4 sm:$0xff]  }
  0xa9   : > { %1454 = vmatpush1.bf16.msra.mxu0 %v4412_v9  ;;  %v4507_v9 = vld [vmem:[#allocation2 + $0xa4] ss:$16 sps:$4 sm:$0xff]  }
  0xaa   : > { %1421 = vmatpush1.bf16.msra.mxu1 %v4409_v8  ;;  %1455 = vmatprep.subr.bf16.mxu0 %v4420_v11  ;;  %v4502_v8 = vld [vmem:[#allocation2 + $0x280] ss:$16 sps:$4 sm:$0xff]  }
  0xab   : > { %1422 = vmatprep.subr.bf16.mxu1 %v4417_v10  ;;  %v4510_v10 = vld [vmem:[#allocation2 + $0x2a4] ss:$16 sps:$4 sm:$0xff]   ;;  %v4505_v11 = vld [vmem:[#allocation2 + $0xa0] ss:$16 sps:$4 sm:$0xff]  }
  0xad   : > { %1456 = vmatpush1.bf16.msra.mxu0 %v4418_v13  ;;  %v4513_v13 = vld [vmem:[#allocation2 + $0xc4] ss:$16 sps:$4 sm:$0xff]  }
  0xae   : > { %1423 = vmatpush1.bf16.msra.mxu1 %v4415_v12  ;;  %1457 = vmatprep.subr.bf16.mxu0 %v4426_v15  ;;  %v4508_v12 = vld [vmem:[#allocation2 + $0x2a0] ss:$16 sps:$4 sm:$0xff]  }
  0xaf   : > { %1424 = vmatprep.subr.bf16.mxu1 %v4423_v14  ;;  %v4516_v14 = vld [vmem:[#allocation2 + $0x2c4] ss:$16 sps:$4 sm:$0xff]   ;;  %v4511_v15 = vld [vmem:[#allocation2 + $0xc0] ss:$16 sps:$4 sm:$0xff]  }
  0xb1   : > { %1458 = vmatpush1.bf16.msra.mxu0 %v4424_v17  ;;  %v4519_v17 = vld [vmem:[#allocation2 + $0xe4] ss:$16 sps:$4 sm:$0xff]  }
  0xb2   : > { %1425 = vmatpush1.bf16.msra.mxu1 %v4421_v16  ;;  %1459 = vmatprep.subr.bf16.mxu0 %v4432_v19  ;;  %v4514_v16 = vld [vmem:[#allocation2 + $0x2c0] ss:$16 sps:$4 sm:$0xff]  }
  0xb3   : > { %1426 = vmatprep.subr.bf16.mxu1 %v4429_v18  ;;  %v4522_v18 = vld [vmem:[#allocation2 + $0x2e4] ss:$16 sps:$4 sm:$0xff]   ;;  %v4517_v19 = vld [vmem:[#allocation2 + $0xe0] ss:$16 sps:$4 sm:$0xff]  }
  0xb5   : > { %1460 = vmatpush1.bf16.msra.mxu0 %v4430_v21  ;;  %v4525_v21 = vld [vmem:[#allocation2 + $0x104] ss:$16 sps:$4 sm:$0xff]  }
  0xb6   : > { %1427 = vmatpush1.bf16.msra.mxu1 %v4427_v20  ;;  %1461 = vmatprep.subr.bf16.mxu0 %v4438_v23  ;;  %v4520_v20 = vld [vmem:[#allocation2 + $0x2e0] ss:$16 sps:$4 sm:$0xff]  }
  0xb7   : > { %1428 = vmatprep.subr.bf16.mxu1 %v4435_v22  ;;  %v4528_v22 = vld [vmem:[#allocation2 + $0x304] ss:$16 sps:$4 sm:$0xff]   ;;  %v4523_v23 = vld [vmem:[#allocation2 + $0x100] ss:$16 sps:$4 sm:$0xff]  }
  0xb9   : > { %1462 = vmatpush1.bf16.msra.mxu0 %v4436_v27  ;;  %v4531_v27 = vld [vmem:[#allocation2 + $0x124] ss:$16 sps:$4 sm:$0xff]  }
  0xba   : > { %1429 = vmatpush1.bf16.msra.mxu1 %v4433_v24  ;;  %1463 = vmatprep.subr.bf16.mxu0 %v4444_v29  ;;  %v4526_v24 = vld [vmem:[#allocation2 + $0x300] ss:$16 sps:$4 sm:$0xff]  }
  0xbb   : > { %1430 = vmatprep.subr.bf16.mxu1 %v4441_v28  ;;  %v4534_v28 = vld [vmem:[#allocation2 + $0x324] ss:$16 sps:$4 sm:$0xff]   ;;  %v4529_v29 = vld [vmem:[#allocation2 + $0x120] ss:$16 sps:$4 sm:$0xff]  }
  0xbd   : > { %1464 = vmatpush1.bf16.msra.mxu0 %v4442_v31  ;;  %v4537_v31 = vld [vmem:[#allocation2 + $0x144] ss:$16 sps:$4 sm:$0xff]  }
  0xbe   : > { %1431 = vmatpush1.bf16.msra.mxu1 %v4439_v30  ;;  %1465 = vmatprep.subr.bf16.mxu0 %v4450_v33  ;;  %v4532_v30 = vld [vmem:[#allocation2 + $0x320] ss:$16 sps:$4 sm:$0xff]  }
  0xbf   : > { %1432 = vmatprep.subr.bf16.mxu1 %v4447_v32  ;;  %v4540_v32 = vld [vmem:[#allocation2 + $0x344] ss:$16 sps:$4 sm:$0xff]   ;;  %v4535_v33 = vld [vmem:[#allocation2 + $0x140] ss:$16 sps:$4 sm:$0xff]  }
  0xc1   : > { %1466 = vmatpush1.bf16.msra.mxu0 %v4448_v35  ;;  %v4543_v35 = vld [vmem:[#allocation2 + $0x164] ss:$16 sps:$4 sm:$0xff]  }
  0xc2   : > { %1433 = vmatpush1.bf16.msra.mxu1 %v4445_v34  ;;  %1467 = vmatprep.subr.bf16.mxu0 %v4453_v36  ;;  %v4538_v34 = vld [vmem:[#allocation2 + $0x340] ss:$16 sps:$4 sm:$0xff]   ;;  %v4546_v36 = vld [vmem:[#allocation2 + $0x364] ss:$16 sps:$4 sm:$0xff]  }
  0xc3   : > { %1484 = vmatprep.subr.bf16.mxu1 %v4456_v38  ;;  %v4541_v38 = vld [vmem:[#allocation2 + $0x160] ss:$16 sps:$4 sm:$0xff]  }
  0xc5   : > { %1435 = vmatmul.mubr.bf16.vlgmr.msra.gmra.mrb[4].mxu1 %v5127_v25  ;;  %1468 = vmatpush1.bf16.msra.mxu0 %v4451_v39  ;;  %v4469_v25 = vld [vmem:[#allocation2 + $0x868] ss:$16 sps:$4 sm:$0xff]   ;;  %v4544_v39 = vld [vmem:[#allocation2 + $0x360] ss:$16 sps:$4 sm:$0xff]  }
  0xc6   : > { %1485 = vmatpush1.bf16.msra.mxu1 %v4454_v40  ;;  %1469 = vmatprep.subr.bf16.mxu0 %v4459_v41  ;;  %v4549_v40 = vld [vmem:[#allocation2 + $0x184] ss:$16 sps:$4 sm:$0xff]  }
  0xc7   : > { %1486 = vmatprep.subr.bf16.mxu1 %v4462_v42  ;;  %1516 = vmatprep.mubr.bf16.mxu1 %v4999_v37  ;;  %v4552_v41 = vld [vmem:[#allocation2 + $0x384] ss:$16 sps:$4 sm:$0xff]   ;;  %v4547_v42 = vld [vmem:[#allocation2 + $0x180] ss:$16 sps:$4 sm:$0xff]  }
  0xc9   : > { %1470 = vmatpush1.bf16.msra.mxu0 %v4457_v43  ;;  %v4550_v43 = vld [vmem:[#allocation2 + $0x380] ss:$16 sps:$4 sm:$0xff]  }
  0xca   : > { %1487 = vmatpush1.bf16.msra.mxu1 %v4460_v44  ;;  %1471 = vmatprep.subr.bf16.mxu0 %v4465_v45  ;;  %v4555_v44 = vld [vmem:[#allocation2 + $0x1a4] ss:$16 sps:$4 sm:$0xff]  }
  0xcb   : > { %1488 = vmatprep.subr.bf16.mxu1 %v4468_v46  ;;  %v4558_v45 = vld [vmem:[#allocation2 + $0x3a4] ss:$16 sps:$4 sm:$0xff]   ;;  %v4553_v46 = vld [vmem:[#allocation2 + $0x1a0] ss:$16 sps:$4 sm:$0xff]  }
  0xcd   : > { %1472 = vmatpush1.bf16.msra.mxu0 %v4463_v47  ;;  %v4556_v47 = vld [vmem:[#allocation2 + $0x3a0] ss:$16 sps:$4 sm:$0xff]  }
  0xce   : > { %1489 = vmatpush1.bf16.msra.mxu1 %v4466_v49  ;;  %1473 = vmatprep.subr.bf16.mxu0 %v4471_v52  ;;  %v4561_v49 = vld [vmem:[#allocation2 + $0x1c4] ss:$16 sps:$4 sm:$0xff]  }
  0xcf   : > { %1490 = vmatprep.subr.bf16.mxu1 %v4474_v53  ;;  %v4564_v52 = vld [vmem:[#allocation2 + $0x3c4] ss:$16 sps:$4 sm:$0xff]   ;;  %v4559_v53 = vld [vmem:[#allocation2 + $0x1c0] ss:$16 sps:$4 sm:$0xff]  }
  0xd1   : > { %1474 = vmatpush1.bf16.msra.mxu0 %v4469_v25  ;;  %v4562_v25 = vld [vmem:[#allocation2 + $0x3c0] ss:$16 sps:$4 sm:$0xff]  }
  0xd2   : > { %1491 = vmatpush1.bf16.msra.mxu1 %v4472_v54  ;;  %2257 = vmatprep.subr.bf16.mxu0 %v4477_v55  ;;  %v4567_v54 = vld [vmem:[#allocation2 + $0x1e4] ss:$16 sps:$4 sm:$0xff]  }
  0xd3   : > { %2298 = vmatprep.subr.bf16.mxu1 %v4480_v56  ;;  %v4570_v55 = vld [vmem:[#allocation2 + $0x3e4] ss:$16 sps:$4 sm:$0xff]   ;;  %v4565_v56 = vld [vmem:[#allocation2 + $0x1e0] ss:$16 sps:$4 sm:$0xff]  }
  0xd4   : > { %1476 = vmatmul.mubr.bf16.vlgmr.msra.gmra.mrb[8].mxu0 %v5129_v26  ;;  %v4495_v26 = vld [vmem:[#allocation2 + $0x64] ss:$16 sps:$4 sm:$0xff]  }
  0xd5   : > { %3915 = vmatmul.mubr.msk.bf16.vlgmr.msra.gmra.mrb[8].mxu1 %vm1275_vm0, %v5136_v51  ;;  %2258 = vmatpush1.bf16.msra.mxu0 %v4475_v57  ;;  %v4498_v51 = vld [vmem:[#allocation2 + $0x264] ss:$16 sps:$4 sm:$0xff]   ;;  %v4568_v57 = vld [vmem:[#allocation2 + $0x3e0] ss:$16 sps:$4 sm:$0xff]  }
  0xd6   : > { %2299 = vmatpush1.bf16.msra.mxu1 %v4478_v58  ;;  %2259 = vmatprep.subr.bf16.mxu0 %v4483_v59  ;;  %v4577_v58 = vld [vmem:[#allocation2 + $0x404] ss:$16 sps:$4 sm:$0xff]   ;;  %v4580_v59 = vld [vmem:[#allocation2 + $0xc] ss:$16 sps:$4 sm:$0xff]  }
  0xd7   : > { %2300 = vmatprep.subr.bf16.mxu1 %v4486_v60  ;;  %2289 = vmatprep.mubr.bf16.mxu0 %v5145_v61  ;;  %v4917_v60 = vld [vmem:[%s5110_s20] sm:$0xff] }
  0xd8   : > { %2330 = vmatprep.mubr.bf16.mxu1 %v5149_v62 }
  0xd9   : > { %2260 = vmatpush1.bf16.msra.mxu0 %v4481_v63  ;;  %v5157_v63 = vcombine.low %v4917_v60, %v4917_v60  ;;  %v4663_v60 = vld [vmem:[#allocation2 + $0x348] ss:$16 sps:$4 sm:$0xff]  }
  0xda   : > { %2301 = vmatpush1.bf16.msra.mxu1 %v4484_v0  ;;  %2261 = vmatprep.subr.bf16.mxu0 %v4489_v1  ;;  %v4918_v0 = vld [vmem:[%s5110_s20 + $0x8] sm:$0xff] }
  0xdb   : > { %2302 = vmatprep.subr.bf16.mxu1 %v4492_v2  ;;  %v5160_v1 = vcombine.low %v4918_v0, %v4918_v0  ;;  %v4575_v2 = vld [vmem:[#allocation2 + $0x400] ss:$16 sps:$4 sm:$0xff]   ;;  %v4668_v0 = vld [vmem:[#allocation2 + $0x1ec] ss:$16 sps:$4 sm:$0xff]  }
  0xdd   : > { %2262 = vmatpush1.bf16.msra.mxu0 %v4487_v48  ;;  %v4578_v48 = vld [vmem:[#allocation2 + $0x8] ss:$16 sps:$4 sm:$0xff]  }
  0xde   : > { %2303 = vmatpush1.bf16.msra.mxu1 %v4490_v50  ;;  %2263 = vmatprep.subr.bf16.mxu0 %v4495_v26  ;;  %v4583_v50 = vld [vmem:[#allocation2 + $0x424] ss:$16 sps:$4 sm:$0xff]   ;;  %v4586_v26 = vld [vmem:[#allocation2 + $0x2c] ss:$16 sps:$4 sm:$0xff]  }
  0xdf   : > { %2304 = vmatprep.subr.bf16.mxu1 %v4498_v51  ;;  %v4581_v51 = vld [vmem:[#allocation2 + $0x420] ss:$16 sps:$4 sm:$0xff]  }
  0xe1   : > { %2264 = vmatpush1.bf16.msra.mxu0 %v4493_v4  ;;  %v4584_v4 = vld [vmem:[#allocation2 + $0x28] ss:$16 sps:$4 sm:$0xff]  }
  0xe2   : > { %2305 = vmatpush1.bf16.msra.mxu1 %v4496_v5  ;;  %2265 = vmatprep.subr.bf16.mxu0 %v4501_v3  ;;  %v4589_v5 = vld [vmem:[#allocation2 + $0x444] ss:$16 sps:$4 sm:$0xff]   ;;  %v4592_v3 = vld [vmem:[#allocation2 + $0x4c] ss:$16 sps:$4 sm:$0xff]  }
  0xe3   : > { %2306 = vmatprep.subr.bf16.mxu1 %v4504_v6  ;;  %v4587_v6 = vld [vmem:[#allocation2 + $0x440] ss:$16 sps:$4 sm:$0xff]  }
  0xe5   : > { %2266 = vmatpush1.bf16.msra.mxu0 %v4499_v7  ;;  %v4590_v7 = vld [vmem:[#allocation2 + $0x48] ss:$16 sps:$4 sm:$0xff]  }
  0xe6   : > { %2307 = vmatpush1.bf16.msra.mxu1 %v4502_v8  ;;  %2267 = vmatprep.subr.bf16.mxu0 %v4507_v9  ;;  %v4595_v8 = vld [vmem:[#allocation2 + $0x464] ss:$16 sps:$4 sm:$0xff]   ;;  %v4598_v9 = vld [vmem:[#allocation2 + $0x6c] ss:$16 sps:$4 sm:$0xff]  }
  0xe7   : > { %2308 = vmatprep.subr.bf16.mxu1 %v4510_v10  ;;  %v4593_v10 = vld [vmem:[#allocation2 + $0x460] ss:$16 sps:$4 sm:$0xff]  }
  0xe9   : > { %2268 = vmatpush1.bf16.msra.mxu0 %v4505_v11  ;;  %v4596_v11 = vld [vmem:[#allocation2 + $0x68] ss:$16 sps:$4 sm:$0xff]  }
  0xea   : > { %2309 = vmatpush1.bf16.msra.mxu1 %v4508_v12  ;;  %2269 = vmatprep.subr.bf16.mxu0 %v4513_v13  ;;  %v4602_v12 = vld [vmem:[#allocation2 + $0x8c] ss:$16 sps:$4 sm:$0xff]  }
  0xeb   : > { %2310 = vmatprep.subr.bf16.mxu1 %v4516_v14  ;;  %v4605_v13 = vld [vmem:[#allocation2 + $0x20c] ss:$16 sps:$4 sm:$0xff]   ;;  %v4919_v14 = vld [vmem:[%s5110_s20 + $0x10] sm:$0xf] }
  0xed   : > { %2270 = vmatpush1.bf16.msra.mxu0 %v4511_v15  ;;  %v5167_v15 = vcombine.low %v4919_v14, %v4919_v14  ;;  %v4687_v14 = vld [vmem:[#allocation2 + $0x448] ss:$16 sps:$4 sm:$0xff]  }
  0xee   : > { %2311 = vmatpush1.bf16.msra.mxu1 %v4514_v16  ;;  %2271 = vmatprep.subr.bf16.mxu0 %v4519_v17  ;;  %v4603_v16 = vld [vmem:[#allocation2 + $0x208] ss:$16 sps:$4 sm:$0xff]   ;;  %v4608_v17 = vld [vmem:[#allocation2 + $0xac] ss:$16 sps:$4 sm:$0xff]  }
  0xef   : > { %2312 = vmatprep.subr.bf16.mxu1 %v4522_v18  ;;  %v4611_v18 = vld [vmem:[#allocation2 + $0x22c] ss:$16 sps:$4 sm:$0xff]  }
  0xf1   : > { %2272 = vmatpush1.bf16.msra.mxu0 %v4517_v19  ;;  %v4606_v19 = vld [vmem:[#allocation2 + $0xa8] ss:$16 sps:$4 sm:$0xff]  }
  0xf2   : > { %2313 = vmatpush1.bf16.msra.mxu1 %v4520_v20  ;;  %2273 = vmatprep.subr.bf16.mxu0 %v4525_v21  ;;  %v4609_v20 = vld [vmem:[#allocation2 + $0x228] ss:$16 sps:$4 sm:$0xff]   ;;  %v4614_v21 = vld [vmem:[#allocation2 + $0xcc] ss:$16 sps:$4 sm:$0xff]  }
  0xf3   : > { %2314 = vmatprep.subr.bf16.mxu1 %v4528_v22  ;;  %v4617_v22 = vld [vmem:[#allocation2 + $0x24c] ss:$16 sps:$4 sm:$0xff]  }
  0xf5   : > { %2274 = vmatpush1.bf16.msra.mxu0 %v4523_v23  ;;  %v4612_v23 = vld [vmem:[#allocation2 + $0xc8] ss:$16 sps:$4 sm:$0xff]  }
  0xf6   : > { %2315 = vmatpush1.bf16.msra.mxu1 %v4526_v24  ;;  %2275 = vmatprep.subr.bf16.mxu0 %v4531_v27  ;;  %v4615_v24 = vld [vmem:[#allocation2 + $0x248] ss:$16 sps:$4 sm:$0xff]   ;;  %v4620_v27 = vld [vmem:[#allocation2 + $0xec] ss:$16 sps:$4 sm:$0xff]  }
  0xf7   : > { %2316 = vmatprep.subr.bf16.mxu1 %v4534_v28  ;;  %v4623_v28 = vld [vmem:[#allocation2 + $0x26c] ss:$16 sps:$4 sm:$0xff]  }
  0xf9   : > { %2276 = vmatpush1.bf16.msra.mxu0 %v4529_v29  ;;  %v4618_v29 = vld [vmem:[#allocation2 + $0xe8] ss:$16 sps:$4 sm:$0xff]  }
  0xfa   : > { %2317 = vmatpush1.bf16.msra.mxu1 %v4532_v30  ;;  %2277 = vmatprep.subr.bf16.mxu0 %v4537_v31  ;;  %v4621_v30 = vld [vmem:[#allocation2 + $0x268] ss:$16 sps:$4 sm:$0xff]   ;;  %v4626_v31 = vld [vmem:[#allocation2 + $0x10c] ss:$16 sps:$4 sm:$0xff]  }
  0xfb   : > { %2318 = vmatprep.subr.bf16.mxu1 %v4540_v32  ;;  %v4629_v32 = vld [vmem:[#allocation2 + $0x28c] ss:$16 sps:$4 sm:$0xff]  }
  0xfd   : > { %2278 = vmatpush1.bf16.msra.mxu0 %v4535_v33  ;;  %v4624_v33 = vld [vmem:[#allocation2 + $0x108] ss:$16 sps:$4 sm:$0xff]  }
  0xfe   : > { %2319 = vmatpush1.bf16.msra.mxu1 %v4538_v34  ;;  %2279 = vmatprep.subr.bf16.mxu0 %v4543_v35  ;;  %v4632_v34 = vld [vmem:[#allocation2 + $0x12c] ss:$16 sps:$4 sm:$0xff]  }
  0xff   : > { %2320 = vmatprep.subr.bf16.mxu1 %v4546_v36  ;;  %v4635_v35 = vld [vmem:[#allocation2 + $0x2ac] ss:$16 sps:$4 sm:$0xff]   ;;  %v4630_v36 = vld [vmem:[#allocation2 + $0x128] ss:$16 sps:$4 sm:$0xff]  }
 0x101   : > { %2280 = vmatpush1.bf16.msra.mxu0 %v4541_v38  ;;  %v4633_v38 = vld [vmem:[#allocation2 + $0x2a8] ss:$16 sps:$4 sm:$0xff]  }
 0x102   : > { %2321 = vmatpush1.bf16.msra.mxu1 %v4544_v39  ;;  %2281 = vmatprep.subr.bf16.mxu0 %v4549_v40  ;;  %v4638_v39 = vld [vmem:[#allocation2 + $0x14c] ss:$16 sps:$4 sm:$0xff]  }
 0x103   : > { %2322 = vmatprep.subr.bf16.mxu1 %v4552_v41  ;;  %v4641_v40 = vld [vmem:[#allocation2 + $0x2cc] ss:$16 sps:$4 sm:$0xff]   ;;  %v4636_v41 = vld [vmem:[#allocation2 + $0x148] ss:$16 sps:$4 sm:$0xff]  }
 0x105   : > { %2282 = vmatpush1.bf16.msra.mxu0 %v4547_v42  ;;  %v4639_v42 = vld [vmem:[#allocation2 + $0x2c8] ss:$16 sps:$4 sm:$0xff]  }
 0x106   : > { %2323 = vmatpush1.bf16.msra.mxu1 %v4550_v43  ;;  %2283 = vmatprep.subr.bf16.mxu0 %v4555_v44  ;;  %v4644_v43 = vld [vmem:[#allocation2 + $0x16c] ss:$16 sps:$4 sm:$0xff]  }
 0x107   : > { %2324 = vmatprep.subr.bf16.mxu1 %v4558_v45  ;;  %v4647_v44 = vld [vmem:[#allocation2 + $0x2ec] ss:$16 sps:$4 sm:$0xff]   ;;  %v4642_v45 = vld [vmem:[#allocation2 + $0x168] ss:$16 sps:$4 sm:$0xff]  }
 0x109   : > { %2284 = vmatpush1.bf16.msra.mxu0 %v4553_v46  ;;  %v4645_v46 = vld [vmem:[#allocation2 + $0x2e8] ss:$16 sps:$4 sm:$0xff]  }
 0x10a   : > { %2325 = vmatpush1.bf16.msra.mxu1 %v4556_v47  ;;  %2285 = vmatprep.subr.bf16.mxu0 %v4561_v49  ;;  %v4650_v47 = vld [vmem:[#allocation2 + $0x18c] ss:$16 sps:$4 sm:$0xff]  }
 0x10b   : > { %2326 = vmatprep.subr.bf16.mxu1 %v4564_v52  ;;  %v4653_v49 = vld [vmem:[#allocation2 + $0x30c] ss:$16 sps:$4 sm:$0xff]   ;;  %v4648_v52 = vld [vmem:[#allocation2 + $0x188] ss:$16 sps:$4 sm:$0xff]  }
 0x10d   : > { %2286 = vmatpush1.bf16.msra.mxu0 %v4559_v53  ;;  %v4651_v53 = vld [vmem:[#allocation2 + $0x308] ss:$16 sps:$4 sm:$0xff]  }
 0x10e   : > { %2327 = vmatpush1.bf16.msra.mxu1 %v4562_v25  ;;  %2287 = vmatprep.subr.bf16.mxu0 %v4567_v54  ;;  %v4656_v25 = vld [vmem:[#allocation2 + $0x1ac] ss:$16 sps:$4 sm:$0xff]  }
 0x10f   : > { %2328 = vmatprep.subr.bf16.mxu1 %v4570_v55  ;;  %v4659_v54 = vld [vmem:[#allocation2 + $0x32c] ss:$16 sps:$4 sm:$0xff]   ;;  %v4654_v55 = vld [vmem:[#allocation2 + $0x1a8] ss:$16 sps:$4 sm:$0xff]  }
 0x111   : > { %2288 = vmatpush1.bf16.msra.mxu0 %v4565_v56  ;;  %v4657_v56 = vld [vmem:[#allocation2 + $0x328] ss:$16 sps:$4 sm:$0xff]  }
 0x112   : > { %2329 = vmatpush1.bf16.msra.mxu1 %v4568_v57  ;;  %2339 = vmatprep.subr.bf16.mxu0 %v4577_v58  ;;  %v4662_v57 = vld [vmem:[#allocation2 + $0x1cc] ss:$16 sps:$4 sm:$0xff]  }
 0x113   : > { %2380 = vmatprep.subr.bf16.mxu1 %v4580_v59  ;;  %v4665_v58 = vld [vmem:[#allocation2 + $0x34c] ss:$16 sps:$4 sm:$0xff]   ;;  %v4660_v59 = vld [vmem:[#allocation2 + $0x1c8] ss:$16 sps:$4 sm:$0xff]  }
 0x114   : > { %2290 = vmatmul.mubr.bf16.vlgmr.msra.gmra.mrb[12].mxu0 %v5157_v63 }
 0x115   : > { %2331 = vmatmul.mubr.bf16.vlgmr.msra.gmra.mrb[12].mxu1 %v5160_v1  ;;  %2340 = vmatpush1.bf16.msra.mxu0 %v4575_v2  ;;  %v4671_v2 = vld [vmem:[#allocation2 + $0x36c] ss:$16 sps:$4 sm:$0xff]  }
 0x116   : > { %2381 = vmatpush1.bf16.msra.mxu1 %v4578_v48  ;;  %2341 = vmatprep.subr.bf16.mxu0 %v4583_v50  ;;  %v4666_v48 = vld [vmem:[#allocation2 + $0x1e8] ss:$16 sps:$4 sm:$0xff]  }
 0x117   : > { %2382 = vmatprep.subr.bf16.mxu1 %v4586_v26  ;;  %2371 = vmatprep.mubr.bf16.mxu0 %v4999_v37  ;;  %v4669_v50 = vld [vmem:[#allocation2 + $0x368] ss:$16 sps:$4 sm:$0xff]   ;;  %v4674_v26 = vld [vmem:[#allocation2 + $0x38c] ss:$16 sps:$4 sm:$0xff]  }
 0x118   : > { %2412 = vmatprep.mubr.bf16.mxu1 %v5145_v61  ;;  %v4600_v61 = vld [vmem:[#allocation2 + $0x88] ss:$16 sps:$4 sm:$0xff]  }
 0x119   : > { %2342 = vmatpush1.bf16.msra.mxu0 %v4581_v51  ;;  %v4677_v51 = vld [vmem:[#allocation2 + $0x40c] ss:$16 sps:$4 sm:$0xff]  }
 0x11a   : > { %2383 = vmatpush1.bf16.msra.mxu1 %v4584_v4  ;;  %2343 = vmatprep.subr.bf16.mxu0 %v4589_v5  ;;  %v4672_v4 = vld [vmem:[#allocation2 + $0x388] ss:$16 sps:$4 sm:$0xff]  }
 0x11b   : > { %2384 = vmatprep.subr.bf16.mxu1 %v4592_v3  ;;  %v4675_v5 = vld [vmem:[#allocation2 + $0x408] ss:$16 sps:$4 sm:$0xff]   ;;  %v4680_v3 = vld [vmem:[#allocation2 + $0x3ac] ss:$16 sps:$4 sm:$0xff]  }
 0x11d   : > { %2344 = vmatpush1.bf16.msra.mxu0 %v4587_v6  ;;  %v4683_v6 = vld [vmem:[#allocation2 + $0x42c] ss:$16 sps:$4 sm:$0xff]  }
 0x11e   : > { %2385 = vmatpush1.bf16.msra.mxu1 %v4590_v7  ;;  %2345 = vmatprep.subr.bf16.mxu0 %v4595_v8  ;;  %v4678_v7 = vld [vmem:[#allocation2 + $0x3a8] ss:$16 sps:$4 sm:$0xff]  }
 0x11f   : > { %2386 = vmatprep.subr.bf16.mxu1 %v4598_v9  ;;  %v4681_v8 = vld [vmem:[#allocation2 + $0x428] ss:$16 sps:$4 sm:$0xff]   ;;  %v4686_v9 = vld [vmem:[#allocation2 + $0x3cc] ss:$16 sps:$4 sm:$0xff]  }
 0x121   : > { %2346 = vmatpush1.bf16.msra.mxu0 %v4593_v10  ;;  %v4689_v10 = vld [vmem:[#allocation2 + $0x44c] ss:$16 sps:$4 sm:$0xff]  }
 0x122   : > { %2387 = vmatpush1.bf16.msra.mxu1 %v4596_v11  ;;  %2421 = vmatprep.subr.bf16.mxu0 %v4605_v13  ;;  %v4684_v13 = vld [vmem:[#allocation2 + $0x3c8] ss:$16 sps:$4 sm:$0xff]  }
 0x123   : > { %2388 = vmatprep.subr.bf16.mxu1 %v4602_v12 }
 0x124   : > { %4065 = vmatmul.mubr.msk.bf16.vlgmr.msra.gmra.mrb[16].mxu0 %vm1275_vm0, %v5167_v15 }
 0x125   : > { %2422 = vmatpush1.bf16.msra.mxu0 %v4603_v16  ;;  %2453 = vmatprep.mubr.bf16.mxu0 %v5149_v62  ;;  %v4627_v62 = vld [vmem:[#allocation2 + $0x288] ss:$16 sps:$4 sm:$0xff]  }
 0x126   : > { %2389 = vmatpush1.bf16.msra.mxu1 %v4600_v61  ;;  %2423 = vmatprep.subr.bf16.mxu0 %v4611_v18 }
 0x127   : > { %2390 = vmatprep.subr.bf16.mxu1 %v4608_v17 }
 0x129   : > { %2424 = vmatpush1.bf16.msra.mxu0 %v4609_v20  ;;  %v4692_v20 = vld [vmem:[#allocation2 + $0x3ec] ss:$16 sps:$4 sm:$0xff]  }
 0x12a   : > { %2391 = vmatpush1.bf16.msra.mxu1 %v4606_v19  ;;  %2425 = vmatprep.subr.bf16.mxu0 %v4617_v22 }
 0x12b   : > { %2392 = vmatprep.subr.bf16.mxu1 %v4614_v21  ;;  %v4695_v21 = vld [vmem:[#allocation2 + $0x46c] ss:$16 sps:$4 sm:$0xff]  }
 0x12d   : > { %2426 = vmatpush1.bf16.msra.mxu0 %v4615_v24  ;;  %v5175_v24 = vld [vmem:[%s5110_s20] sm:$0xee] }
 0x12e   : > { %2393 = vmatpush1.bf16.msra.mxu1 %v4612_v23  ;;  %2427 = vmatprep.subr.bf16.mxu0 %v4623_v28  ;;  %v4690_v28 = vld [vmem:[#allocation2 + $0x3e8] ss:$16 sps:$4 sm:$0xff]  }
 0x12f   : > { %2394 = vmatprep.subr.bf16.mxu1 %v4620_v27  ;;  %v5178_v27 = vld [vmem:[%s5110_s20 + $0x8] sm:$0xee] }
 0x131   : > { %2428 = vmatpush1.bf16.msra.mxu0 %v4621_v30  ;;  %v4698_v30 = vld [vmem:[#allocation2 + $0x904] ss:$16 sps:$4 sm:$0xff]  }
 0x132   : > { %2395 = vmatpush1.bf16.msra.mxu1 %v4618_v29  ;;  %2429 = vmatprep.subr.bf16.mxu0 %v4629_v32  ;;  %v4693_v29 = vld [vmem:[#allocation2 + $0x468] ss:$16 sps:$4 sm:$0xff]  }
 0x133   : > { %2396 = vmatprep.subr.bf16.mxu1 %v4626_v31  ;;  %v4701_v31 = vld [vmem:[#allocation2 + $0xb04] ss:$16 sps:$4 sm:$0xff]  }
 0x134   : > { %v5181_v32 = vld [vmem:[%s5110_s20 + $0x14] sm:$0x11] }
 0x135   : > { %2430 = vmatpush1.bf16.msra.mxu0 %v4627_v62  ;;  %v5186_v62 = vld [vmem:[%s5110_s20 + $0x1c] sm:$0x11] }
 0x136   : > { %2397 = vmatpush1.bf16.msra.mxu1 %v4624_v33  ;;  %2431 = vmatprep.subr.bf16.mxu0 %v4635_v35  ;;  %v4068_v33 = vcombine.high %v5175_v24, %v5181_v32  ;;  %v4696_v35 = vld [vmem:[#allocation2 + $0x900] ss:$16 sps:$4 sm:$0xff]  }
 0x137   : > { %2398 = vmatprep.subr.bf16.mxu1 %v4632_v34  ;;  %v4070_v34 = vcombine.high %v5178_v27, %v5186_v62 }
 0x139   : > { %2432 = vmatpush1.bf16.msra.mxu0 %v4633_v38  ;;  %v4704_v38 = vld [vmem:[#allocation2 + $0x924] ss:$16 sps:$4 sm:$0xff]  }
 0x13a   : > { %2399 = vmatpush1.bf16.msra.mxu1 %v4630_v36  ;;  %2433 = vmatprep.subr.bf16.mxu0 %v4641_v40  ;;  %v4699_v36 = vld [vmem:[#allocation2 + $0xb00] ss:$16 sps:$4 sm:$0xff]   ;;  %v5190_v40 = vrot.slane %v4068_v33, 1 }
 0x13b   : > { %2400 = vmatprep.subr.bf16.mxu1 %v4638_v39  ;;  %v4707_v39 = vld [vmem:[#allocation2 + $0xb24] ss:$16 sps:$4 sm:$0xff]   ;;  %v4771_v33 = vld [vmem:[#allocation2 + $0xc80] ss:$16 sps:$4 sm:$0xff]  }
 0x13d   : > { %2434 = vmatpush1.bf16.msra.mxu0 %v4639_v42  ;;  %v4702_v42 = vld [vmem:[#allocation2 + $0x920] ss:$16 sps:$4 sm:$0xff]  }
 0x13e   : > { %2401 = vmatpush1.bf16.msra.mxu1 %v4636_v41  ;;  %2435 = vmatprep.subr.bf16.mxu0 %v4647_v44  ;;  %v5192_v41 = vrot.slane %v4070_v34, 1  ;;  %v4710_v44 = vld [vmem:[#allocation2 + $0x944] ss:$16 sps:$4 sm:$0xff]  }
 0x13f   : > { %2402 = vmatprep.subr.bf16.mxu1 %v4644_v43  ;;  %v4705_v43 = vld [vmem:[#allocation2 + $0xb20] ss:$16 sps:$4 sm:$0xff]   ;;  %v4776_v34 = vld [vmem:[#allocation2 + $0xaa4] ss:$16 sps:$4 sm:$0xff]  }
 0x141   : > { %2436 = vmatpush1.bf16.msra.mxu0 %v4645_v46 }
 0x142   : > { %2403 = vmatpush1.bf16.msra.mxu1 %v4642_v45  ;;  %2437 = vmatprep.subr.bf16.mxu0 %v4653_v49  ;;  %v4713_v45 = vld [vmem:[#allocation2 + $0xb44] ss:$16 sps:$4 sm:$0xff]  }
 0x143   : > { %2404 = vmatprep.subr.bf16.mxu1 %v4650_v47 }
 0x145   : > { %2438 = vmatpush1.bf16.msra.mxu0 %v4651_v53  ;;  %v4711_v53 = vld [vmem:[#allocation2 + $0xb40] ss:$16 sps:$4 sm:$0xff]  }
 0x146   : > { %2405 = vmatpush1.bf16.msra.mxu1 %v4648_v52  ;;  %2439 = vmatprep.subr.bf16.mxu0 %v4659_v54  ;;  %v4716_v54 = vld [vmem:[#allocation2 + $0x964] ss:$16 sps:$4 sm:$0xff]  }
 0x147   : > { %2406 = vmatprep.subr.bf16.mxu1 %v4656_v25 }
 0x149   : > { %2440 = vmatpush1.bf16.msra.mxu0 %v4657_v56  ;;  %v4714_v56 = vld [vmem:[#allocation2 + $0x960] ss:$16 sps:$4 sm:$0xff]  }
 0x14a   : > { %2407 = vmatpush1.bf16.msra.mxu1 %v4654_v55  ;;  %2441 = vmatprep.subr.bf16.mxu0 %v4665_v58  ;;  %v4719_v55 = vld [vmem:[#allocation2 + $0xb64] ss:$16 sps:$4 sm:$0xff]  }
 0x14b   : > { %2408 = vmatprep.subr.bf16.mxu1 %v4662_v57  ;;  %v4717_v57 = vld [vmem:[#allocation2 + $0xb60] ss:$16 sps:$4 sm:$0xff]   ;;  %v4722_v58 = vld [vmem:[#allocation2 + $0x984] ss:$16 sps:$4 sm:$0xff]  }
 0x14d   : > { %2442 = vmatpush1.bf16.msra.mxu0 %v4663_v60  ;;  %v4720_v60 = vld [vmem:[#allocation2 + $0x980] ss:$16 sps:$4 sm:$0xff]  }
 0x14e   : > { %2409 = vmatpush1.bf16.msra.mxu1 %v4660_v59  ;;  %2443 = vmatprep.subr.bf16.mxu0 %v4671_v2  ;;  %v4725_v59 = vld [vmem:[#allocation2 + $0xb84] ss:$16 sps:$4 sm:$0xff]  }
 0x14f   : > { %2410 = vmatprep.subr.bf16.mxu1 %v4668_v0  ;;  %v4723_v0 = vld [vmem:[#allocation2 + $0xb80] ss:$16 sps:$4 sm:$0xff]   ;;  %v4728_v2 = vld [vmem:[#allocation2 + $0x9a4] ss:$16 sps:$4 sm:$0xff]  }
 0x151   : > { %2444 = vmatpush1.bf16.msra.mxu0 %v4669_v50  ;;  %v4726_v50 = vld [vmem:[#allocation2 + $0x9a0] ss:$16 sps:$4 sm:$0xff]  }
 0x152   : > { %2411 = vmatpush1.bf16.msra.mxu1 %v4666_v48  ;;  %2445 = vmatprep.subr.bf16.mxu0 %v4674_v26  ;;  %v4731_v48 = vld [vmem:[#allocation2 + $0xba4] ss:$16 sps:$4 sm:$0xff]   ;;  %v4729_v26 = vld [vmem:[#allocation2 + $0xba0] ss:$16 sps:$4 sm:$0xff]  }
 0x153   : > { %2462 = vmatprep.subr.bf16.mxu1 %v4677_v51  ;;  %v4734_v51 = vld [vmem:[#allocation2 + $0x9c4] ss:$16 sps:$4 sm:$0xff]  }
 0x155   : > { %2413 = vmatmul.mubr.bf16.vlgmr.msra.gmra.mrb[16].mxu1 %v5157_v63  ;;  %2446 = vmatpush1.bf16.msra.mxu0 %v4672_v4  ;;  %v4737_v4 = vld [vmem:[#allocation2 + $0xbc4] ss:$16 sps:$4 sm:$0xff]  }
 0x156   : > { %2463 = vmatpush1.bf16.msra.mxu1 %v4675_v5  ;;  %2447 = vmatprep.subr.bf16.mxu0 %v4680_v3  ;;  %v4732_v5 = vld [vmem:[#allocation2 + $0x9c0] ss:$16 sps:$4 sm:$0xff]  }
 0x157   : > { %2464 = vmatprep.subr.bf16.mxu1 %v4683_v6  ;;  %v1313_v11 = vpop.f32.mrb[0].mxu0  ;;  %2494 = vmatprep.mubr.bf16.mxu1 %v4999_v37  ;;  %v4735_v3 = vld [vmem:[#allocation2 + $0xbc0] ss:$16 sps:$4 sm:$0xff]   ;;  %v4740_v6 = vld [vmem:[#allocation2 + $0x9e4] ss:$16 sps:$4 sm:$0xff]  }
 0x158   : > { %v1354_v12 = vpop.f32.mrb[0].mxu1  ;;  %v1315_v16 = vpop.f32.mrb[1].mxu0 }
 0x159   : > { %v1355_v61 = vadd.f32 %v1354_v12, %v1313_v11  ;;  %v1356_v17 = vpop.f32.mrb[1].mxu1  ;;  %v1317_v18 = vpop.f32.mrb[2].mxu0  ;;  %2448 = vmatpush1.bf16.msra.mxu0 %v4678_v7  ;;  %v4743_v7 = vld [vmem:[#allocation2 + $0xbe4] ss:$16 sps:$4 sm:$0xff]   ;;  %v4744_v12 = vld [vmem:[#allocation2 + $0xa00] ss:$16 sps:$4 sm:$0xff]  }
 0x15a   : > { %v1357_v63 = vadd.f32 %v1356_v17, %v1315_v16  ;;  %v1358_v19 = vpop.f32.mrb[2].mxu1  ;;  %2465 = vmatpush1.bf16.msra.mxu1 %v4681_v8  ;;  %v1318_v22 = vpop.f32.mrb[3].mxu0  ;;  %2449 = vmatprep.subr.bf16.mxu0 %v4686_v9  ;;  %v4738_v8 = vld [vmem:[#allocation2 + $0x9e0] ss:$16 sps:$4 sm:$0xff]   ;;  %v4749_v11 = vld [vmem:[#allocation2 + $0xc04] ss:$16 sps:$4 sm:$0xff]  }
 0x15b   : > { %v1359_v23 = vpop.f32.mrb[3].mxu1  ;;  %2466 = vmatprep.subr.bf16.mxu1 %v4689_v10  ;;  %v4741_v9 = vld [vmem:[#allocation2 + $0xbe0] ss:$16 sps:$4 sm:$0xff]   ;;  %v4746_v10 = vld [vmem:[#allocation2 + $0xa04] ss:$16 sps:$4 sm:$0xff]  }
 0x15c   : > { %v4750_v16 = vld [vmem:[#allocation2 + $0xa20] ss:$16 sps:$4 sm:$0xff]   ;;  %v4761_v18 = vld [vmem:[#allocation2 + $0xc44] ss:$16 sps:$4 sm:$0xff]  }
 0x15d   : > { %2450 = vmatpush1.bf16.msra.mxu0 %v4684_v13  ;;  %v4747_v13 = vld [vmem:[#allocation2 + $0xc00] ss:$16 sps:$4 sm:$0xff]   ;;  %v4767_v22 = vld [vmem:[#allocation2 + $0xc64] ss:$16 sps:$4 sm:$0xff]  }
 0x15e   : > { %2467 = vmatpush1.bf16.msra.mxu1 %v4687_v14  ;;  %2451 = vmatprep.subr.bf16.mxu0 %v4692_v20  ;;  %v4752_v14 = vld [vmem:[#allocation2 + $0xa24] ss:$16 sps:$4 sm:$0xff]   ;;  %v4753_v17 = vld [vmem:[#allocation2 + $0xc20] ss:$16 sps:$4 sm:$0xff]  }
 0x15f   : > { %2468 = vmatprep.subr.bf16.mxu1 %v4695_v21  ;;  %v4756_v19 = vld [vmem:[#allocation2 + $0xa40] ss:$16 sps:$4 sm:$0xff]   ;;  %v4764_v21 = vld [vmem:[#allocation2 + $0xa64] ss:$16 sps:$4 sm:$0xff]  }
 0x160   : > { %v4759_v20 = vld [vmem:[#allocation2 + $0xc40] ss:$16 sps:$4 sm:$0xff]  }
 0x161   : > { %2452 = vmatpush1.bf16.msra.mxu0 %v4690_v28  ;;  %v4762_v23 = vld [vmem:[#allocation2 + $0xa60] ss:$16 sps:$4 sm:$0xff]  }
 0x162   : > { %2469 = vmatpush1.bf16.msra.mxu1 %v4693_v29  ;;  %3396 = vmatprep.subr.bf16.mxu0 %v4698_v30  ;;  %v4765_v28 = vld [vmem:[#allocation2 + $0xc60] ss:$16 sps:$4 sm:$0xff]   ;;  %v4770_v29 = vld [vmem:[#allocation2 + $0xa84] ss:$16 sps:$4 sm:$0xff]  }
 0x163   : > { %3437 = vmatprep.subr.bf16.mxu1 %v4701_v31  ;;  %v4773_v30 = vld [vmem:[#allocation2 + $0xc84] ss:$16 sps:$4 sm:$0xff]   ;;  %v4768_v31 = vld [vmem:[#allocation2 + $0xa80] ss:$16 sps:$4 sm:$0xff]  }
 0x164   : > { %2454 = vmatmul.mubr.bf16.vlgmr.msra.gmra.mrb[20].mxu0 %v5160_v1 }
 0x165   : > { %4066 = vmatmul.mubr.msk.bf16.vlgmr.msra.gmra.mrb[20].mxu1 %vm1275_vm0, %v5167_v15  ;;  %3397 = vmatpush1.bf16.msra.mxu0 %v4696_v35  ;;  %v4708_v15 = vld [vmem:[#allocation2 + $0x940] ss:$16 sps:$4 sm:$0xff]   ;;  %v4779_v35 = vld [vmem:[#allocation2 + $0xca4] ss:$16 sps:$4 sm:$0xff]  }
 0x166   : > { %3438 = vmatpush1.bf16.msra.mxu1 %v4699_v36  ;;  %3398 = vmatprep.subr.bf16.mxu0 %v4704_v38  ;;  %v4774_v36 = vld [vmem:[#allocation2 + $0xaa0] ss:$16 sps:$4 sm:$0xff]  }
 0x167   : > { %3439 = vmatprep.subr.bf16.mxu1 %v4707_v39  ;;  %v1395_v46 = vpop.f32.mrb[4].mxu0  ;;  %3428 = vmatprep.mubr.bf16.mxu0 %v5190_v40  ;;  %v4777_v38 = vld [vmem:[#allocation2 + $0xca0] ss:$16 sps:$4 sm:$0xff]   ;;  %v4782_v39 = vld [vmem:[#allocation2 + $0xac4] ss:$16 sps:$4 sm:$0xff]  }
 0x168   : > { %3469 = vmatprep.mubr.bf16.mxu1 %v5192_v41  ;;  %v5199_v47 = vadd.f32 %v1395_v46, %v1355_v61  ;;  %v1397_v49 = vpop.f32.mrb[5].mxu0  ;;  %v4755_v61 = vld [vmem:[#allocation2 + $0xc24] ss:$16 sps:$4 sm:$0xff]   ;;  %v4780_v46 = vld [vmem:[#allocation2 + $0xac0] ss:$16 sps:$4 sm:$0xff]  }
 0x169   : > { %v5201_v1 = vadd.f32 %v1397_v49, %v1357_v63  ;;  %v1399_v52 = vpop.f32.mrb[6].mxu0  ;;  %3399 = vmatpush1.bf16.msra.mxu0 %v4702_v42  ;;  %v4758_v63 = vld [vmem:[#allocation2 + $0xa44] ss:$16 sps:$4 sm:$0xff]   ;;  %v4783_v49 = vld [vmem:[#allocation2 + $0xcc0] ss:$16 sps:$4 sm:$0xff]  }
 0x16a   : > { %3440 = vmatpush1.bf16.msra.mxu1 %v4705_v43  ;;  %v1400_v25 = vpop.f32.mrb[7].mxu0  ;;  %3400 = vmatprep.subr.bf16.mxu0 %v4710_v44  ;;  %v4785_v42 = vld [vmem:[#allocation2 + $0xcc4] ss:$16 sps:$4 sm:$0xff]  }
 0x16b   : > { %3441 = vmatprep.subr.bf16.mxu1 %v4713_v45  ;;  %v4067_v25 = vcombine.low %v5175_v24, %v5181_v32  ;;  %v4804_v24 = vld [vmem:[#allocation2 + $0xd24] ss:$16 sps:$4 sm:$0xff]   ;;  %v4802_v32 = vld [vmem:[#allocation2 + $0xd20] ss:$16 sps:$4 sm:$0xff]  }
 0x16d   : > { %3401 = vmatpush1.bf16.msra.mxu0 %v4708_v15  ;;  %v4788_v15 = vld [vmem:[#allocation2 + $0xae4] ss:$16 sps:$4 sm:$0xff]  }
 0x16e   : > { %3442 = vmatpush1.bf16.msra.mxu1 %v4711_v53  ;;  %3402 = vmatprep.subr.bf16.mxu0 %v4716_v54  ;;  %v4791_v53 = vld [vmem:[#allocation2 + $0xce4] ss:$16 sps:$4 sm:$0xff]   ;;  %v4069_v54 = vcombine.low %v5178_v27, %v5186_v62  ;;  %v4807_v27 = vld [vmem:[#allocation2 + $0x92c] ss:$16 sps:$4 sm:$0xff]   ;;  %v4805_v62 = vld [vmem:[#allocation2 + $0x928] ss:$16 sps:$4 sm:$0xff]  }
 0x16f   : > { %3443 = vmatprep.subr.bf16.mxu1 %v4719_v55  ;;  %v4786_v55 = vld [vmem:[#allocation2 + $0xae0] ss:$16 sps:$4 sm:$0xff]  }
 0x171   : > { %3403 = vmatpush1.bf16.msra.mxu0 %v4714_v56  ;;  %v4789_v56 = vld [vmem:[#allocation2 + $0xce0] ss:$16 sps:$4 sm:$0xff]  }
 0x172   : > { %3444 = vmatpush1.bf16.msra.mxu1 %v4717_v57  ;;  %3404 = vmatprep.subr.bf16.mxu0 %v4722_v58  ;;  %v4798_v57 = vld [vmem:[#allocation2 + $0xd04] ss:$16 sps:$4 sm:$0xff]   ;;  %v4801_v58 = vld [vmem:[#allocation2 + $0x90c] ss:$16 sps:$4 sm:$0xff]  }
 0x173   : > { %3445 = vmatprep.subr.bf16.mxu1 %v4725_v59  ;;  %v5207_v59 = vrot.slane %v4067_v25, 1  ;;  %v4854_v25 = vld [vmem:[#allocation2 + $0xba8] ss:$16 sps:$4 sm:$0xff]  }
 0x175   : > { %3405 = vmatpush1.bf16.msra.mxu0 %v4720_v60  ;;  %v5209_v60 = vrot.slane %v4069_v54, 1  ;;  %v4859_v54 = vld [vmem:[#allocation2 + $0xa4c] ss:$16 sps:$4 sm:$0xff]  }
 0x176   : > { %3446 = vmatpush1.bf16.msra.mxu1 %v4723_v0  ;;  %3406 = vmatprep.subr.bf16.mxu0 %v4728_v2  ;;  %v4796_v0 = vld [vmem:[#allocation2 + $0xd00] ss:$16 sps:$4 sm:$0xff]   ;;  %v4799_v2 = vld [vmem:[#allocation2 + $0x908] ss:$16 sps:$4 sm:$0xff]  }
 0x177   : > { %3447 = vmatprep.subr.bf16.mxu1 %v4731_v48  ;;  %v4810_v48 = vld [vmem:[#allocation2 + $0xd44] ss:$16 sps:$4 sm:$0xff]  }
 0x179   : > { %3407 = vmatpush1.bf16.msra.mxu0 %v4726_v50  ;;  %v4813_v50 = vld [vmem:[#allocation2 + $0x94c] ss:$16 sps:$4 sm:$0xff]  }
 0x17a   : > { %3448 = vmatpush1.bf16.msra.mxu1 %v4729_v26  ;;  %3408 = vmatprep.subr.bf16.mxu0 %v4734_v51 }
 0x17b   : > { %3449 = vmatprep.subr.bf16.mxu1 %v4737_v4 }
 0x17d   : > { %3409 = vmatpush1.bf16.msra.mxu0 %v4732_v5 }
 0x17e   : > { %3450 = vmatpush1.bf16.msra.mxu1 %v4735_v3  ;;  %3410 = vmatprep.subr.bf16.mxu0 %v4740_v6  ;;  %v4808_v6 = vld [vmem:[#allocation2 + $0xd40] ss:$16 sps:$4 sm:$0xff]  }
 0x17f   : > { %3451 = vmatprep.subr.bf16.mxu1 %v4743_v7 }
 0x181   : > { %3411 = vmatpush1.bf16.msra.mxu0 %v4738_v8 }
 0x182   : > { %3452 = vmatpush1.bf16.msra.mxu1 %v4741_v9  ;;  %3412 = vmatprep.subr.bf16.mxu0 %v4746_v10  ;;  %v4811_v10 = vld [vmem:[#allocation2 + $0x948] ss:$16 sps:$4 sm:$0xff]  }
 0x183   : > { %3453 = vmatprep.subr.bf16.mxu1 %v4749_v11  ;;  %v2505_v11 = vld [vmem:[%s5110_s20 + $0x10] sm:$0xe] }
 0x185   : > { %3413 = vmatpush1.bf16.msra.mxu0 %v4744_v12 }
 0x186   : > { %3454 = vmatpush1.bf16.msra.mxu1 %v4747_v13  ;;  %3414 = vmatprep.subr.bf16.mxu0 %v4752_v14 }
 0x187   : > { %3455 = vmatprep.subr.bf16.mxu1 %v4755_v61  ;;  %v4816_v61 = vld [vmem:[#allocation2 + $0xd64] ss:$16 sps:$4 sm:$0xff]  }
 0x189   : > { %3415 = vmatpush1.bf16.msra.mxu0 %v4750_v16 }
 0x18a   : > { %3456 = vmatpush1.bf16.msra.mxu1 %v4753_v17  ;;  %3416 = vmatprep.subr.bf16.mxu0 %v4758_v63  ;;  %v4922_v17 = vld [vmem:[%s5110_s20 + $0x24] sm:$0x1] }
 0x18b   : > { %3457 = vmatprep.subr.bf16.mxu1 %v4761_v18  ;;  %v4071_v63 = vcombine.low %v2505_v11, %v4922_v17  ;;  %v4814_v18 = vld [vmem:[#allocation2 + $0xd60] ss:$16 sps:$4 sm:$0xff]   ;;  %v4890_v11 = vld [vmem:[#allocation2 + $0xc68] ss:$16 sps:$4 sm:$0xff]   ;;  %v4901_v17 = vld [vmem:[#allocation2 + $0xcac] ss:$16 sps:$4 sm:$0xff]  }
 0x18d   : > { %3417 = vmatpush1.bf16.msra.mxu0 %v4756_v19  ;;  %v4817_v19 = vld [vmem:[#allocation2 + $0x968] ss:$16 sps:$4 sm:$0xff]  }
 0x18e   : > { %3458 = vmatpush1.bf16.msra.mxu1 %v4759_v20  ;;  %3418 = vmatprep.subr.bf16.mxu0 %v4764_v21  ;;  %v4823_v20 = vld [vmem:[#allocation2 + $0x98c] ss:$16 sps:$4 sm:$0xff]  }
 0x18f   : > { %3459 = vmatprep.subr.bf16.mxu1 %v4767_v22  ;;  %v4826_v21 = vld [vmem:[#allocation2 + $0xb0c] ss:$16 sps:$4 sm:$0xff]   ;;  %v5221_v22 = vrot.slane %v4071_v63, 1 }
 0x190   : > { %v4904_v63 = vld [vmem:[#allocation2 + $0xd2c] ss:$16 sps:$4 sm:$0xff]  }
 0x191   : > { %3419 = vmatpush1.bf16.msra.mxu0 %v4762_v23  ;;  %v4821_v23 = vld [vmem:[#allocation2 + $0x988] ss:$16 sps:$4 sm:$0xff]  }
 0x192   : > { %3460 = vmatpush1.bf16.msra.mxu1 %v4765_v28  ;;  %3420 = vmatprep.subr.bf16.mxu0 %v4770_v29  ;;  %v4824_v28 = vld [vmem:[#allocation2 + $0xb08] ss:$16 sps:$4 sm:$0xff]   ;;  %v4829_v29 = vld [vmem:[#allocation2 + $0x9ac] ss:$16 sps:$4 sm:$0xff]  }
 0x193   : > { %3461 = vmatprep.subr.bf16.mxu1 %v4773_v30  ;;  %v4832_v30 = vld [vmem:[#allocation2 + $0xb2c] ss:$16 sps:$4 sm:$0xff]  }
 0x195   : > { %3421 = vmatpush1.bf16.msra.mxu0 %v4768_v31  ;;  %v4827_v31 = vld [vmem:[#allocation2 + $0x9a8] ss:$16 sps:$4 sm:$0xff]  }
 0x196   : > { %3462 = vmatpush1.bf16.msra.mxu1 %v4771_v33  ;;  %3422 = vmatprep.subr.bf16.mxu0 %v4776_v34  ;;  %v4830_v33 = vld [vmem:[#allocation2 + $0xb28] ss:$16 sps:$4 sm:$0xff]   ;;  %v4835_v34 = vld [vmem:[#allocation2 + $0x9cc] ss:$16 sps:$4 sm:$0xff]  }
 0x197   : > { %3463 = vmatprep.subr.bf16.mxu1 %v4779_v35  ;;  %v4838_v35 = vld [vmem:[#allocation2 + $0xb4c] ss:$16 sps:$4 sm:$0xff]  }
 0x198   : > { %v1436_v43 = vpop.f32.mrb[4].mxu1 }
 0x199   : > { %v1438_v44 = vpop.f32.mrb[5].mxu1  ;;  %3423 = vmatpush1.bf16.msra.mxu0 %v4774_v36  ;;  %v4833_v36 = vld [vmem:[#allocation2 + $0x9c8] ss:$16 sps:$4 sm:$0xff]  }
 0x19a   : > { %v1440_v45 = vpop.f32.mrb[6].mxu1  ;;  %3464 = vmatpush1.bf16.msra.mxu1 %v4777_v38  ;;  %3424 = vmatprep.subr.bf16.mxu0 %v4782_v39  ;;  %v4836_v38 = vld [vmem:[#allocation2 + $0xb48] ss:$16 sps:$4 sm:$0xff]   ;;  %v4841_v39 = vld [vmem:[#allocation2 + $0x9ec] ss:$16 sps:$4 sm:$0xff]  }
 0x19b   : > { %v1441_v52 = vpop.f32.mrb[7].mxu1  ;;  %3465 = vmatprep.subr.bf16.mxu1 %v4785_v42  ;;  %v4844_v42 = vld [vmem:[#allocation2 + $0xb6c] ss:$16 sps:$4 sm:$0xff]  }
 0x19c   : > { %v4847_v45 = vld [vmem:[#allocation2 + $0xa0c] ss:$16 sps:$4 sm:$0xff]  }
 0x19d   : > { %3425 = vmatpush1.bf16.msra.mxu0 %v4780_v46  ;;  %v4850_v46 = vld [vmem:[#allocation2 + $0xb8c] ss:$16 sps:$4 sm:$0xff]  }
 0x19e   : > { %3466 = vmatpush1.bf16.msra.mxu1 %v4783_v49  ;;  %3426 = vmatprep.subr.bf16.mxu0 %v4788_v15  ;;  %v4845_v49 = vld [vmem:[#allocation2 + $0xa08] ss:$16 sps:$4 sm:$0xff]   ;;  %v4853_v52 = vld [vmem:[#allocation2 + $0xa2c] ss:$16 sps:$4 sm:$0xff]  }
 0x19f   : > { %3467 = vmatprep.subr.bf16.mxu1 %v4791_v53  ;;  %v4856_v15 = vld [vmem:[#allocation2 + $0xbac] ss:$16 sps:$4 sm:$0xff]   ;;  %v4851_v53 = vld [vmem:[#allocation2 + $0xa28] ss:$16 sps:$4 sm:$0xff]  }
 0x1a1   : > { %3427 = vmatpush1.bf16.msra.mxu0 %v4786_v55  ;;  %v4862_v55 = vld [vmem:[#allocation2 + $0xbcc] ss:$16 sps:$4 sm:$0xff]  }
 0x1a2   : > { %3468 = vmatpush1.bf16.msra.mxu1 %v4789_v56  ;;  %3478 = vmatprep.subr.bf16.mxu0 %v4798_v57  ;;  %v4857_v56 = vld [vmem:[#allocation2 + $0xa48] ss:$16 sps:$4 sm:$0xff]  }
 0x1a3   : > { %3519 = vmatprep.subr.bf16.mxu1 %v4801_v58  ;;  %v4860_v57 = vld [vmem:[#allocation2 + $0xbc8] ss:$16 sps:$4 sm:$0xff]   ;;  %v4865_v58 = vld [vmem:[#allocation2 + $0xa6c] ss:$16 sps:$4 sm:$0xff]  }
 0x1a4   : > { %3429 = vmatmul.mubr.bf16.vlgmr.msra.gmra.mrb[24].mxu0 %v5207_v59 }
 0x1a5   : > { %3470 = vmatmul.mubr.bf16.vlgmr.msra.gmra.mrb[24].mxu1 %v5209_v60  ;;  %3479 = vmatpush1.bf16.msra.mxu0 %v4796_v0  ;;  %v4868_v0 = vld [vmem:[#allocation2 + $0xbec] ss:$16 sps:$4 sm:$0xff]  }
 0x1a6   : > { %3520 = vmatpush1.bf16.msra.mxu1 %v4799_v2  ;;  %3480 = vmatprep.subr.bf16.mxu0 %v4804_v24  ;;  %v4863_v2 = vld [vmem:[#allocation2 + $0xa68] ss:$16 sps:$4 sm:$0xff]  }
 0x1a7   : > { %3521 = vmatprep.subr.bf16.mxu1 %v4807_v27  ;;  %v1477_v26 = vpop.f32.mrb[8].mxu0  ;;  %3510 = vmatprep.mubr.bf16.mxu0 %v4999_v37  ;;  %v4866_v24 = vld [vmem:[#allocation2 + $0xbe8] ss:$16 sps:$4 sm:$0xff]   ;;  %v4871_v27 = vld [vmem:[#allocation2 + $0xa8c] ss:$16 sps:$4 sm:$0xff]  }
 0x1a8   : > { %v1518_v51 = vpop.f32.mrb[8].mxu1  ;;  %3551 = vmatprep.mubr.bf16.mxu1 %v5190_v40  ;;  %v1478_v4 = vadd.f32 %v1477_v26, %v1436_v43  ;;  %v1479_v5 = vpop.f32.mrb[9].mxu0  ;;  %v4819_v40 = vld [vmem:[#allocation2 + $0x96c] ss:$16 sps:$4 sm:$0xff]   ;;  %v4839_v43 = vld [vmem:[#allocation2 + $0x9e8] ss:$16 sps:$4 sm:$0xff]  }
 0x1a9   : > { %v1520_v3 = vpop.f32.mrb[9].mxu1  ;;  %v1480_v7 = vadd.f32 %v1479_v5, %v1438_v44  ;;  %v1481_v8 = vpop.f32.mrb[10].mxu0  ;;  %3481 = vmatpush1.bf16.msra.mxu0 %v4802_v32  ;;  %v4842_v44 = vld [vmem:[#allocation2 + $0xb68] ss:$16 sps:$4 sm:$0xff]   ;;  %v4874_v32 = vld [vmem:[#allocation2 + $0xc0c] ss:$16 sps:$4 sm:$0xff]  }
 0x1aa   : > { %v1522_v9 = vpop.f32.mrb[10].mxu1  ;;  %3522 = vmatpush1.bf16.msra.mxu1 %v4805_v62  ;;  %v5216_v12 = vadd.f32 %v1518_v51, %v1478_v4  ;;  %v1482_v13 = vpop.f32.mrb[11].mxu0  ;;  %3482 = vmatprep.subr.bf16.mxu0 %v4810_v48  ;;  %v4869_v62 = vld [vmem:[#allocation2 + $0xa88] ss:$16 sps:$4 sm:$0xff]   ;;  %v4880_v26 = vld [vmem:[#allocation2 + $0xc2c] ss:$16 sps:$4 sm:$0xff]  }
 0x1ab   : > { %v1523_v14 = vpop.f32.mrb[11].mxu1  ;;  %3523 = vmatprep.subr.bf16.mxu1 %v4813_v50  ;;  %v5218_v16 = vadd.f32 %v1520_v3, %v1480_v7  ;;  %v4872_v48 = vld [vmem:[#allocation2 + $0xc08] ss:$16 sps:$4 sm:$0xff]   ;;  %v4877_v50 = vld [vmem:[#allocation2 + $0xaac] ss:$16 sps:$4 sm:$0xff]  }
 0x1ac   : > { %v4875_v51 = vld [vmem:[#allocation2 + $0xaa8] ss:$16 sps:$4 sm:$0xff]   ;;  %v4883_v5 = vld [vmem:[#allocation2 + $0xacc] ss:$16 sps:$4 sm:$0xff]  }
 0x1ad   : > { %3483 = vmatpush1.bf16.msra.mxu0 %v4808_v6  ;;  %v4878_v4 = vld [vmem:[#allocation2 + $0xc28] ss:$16 sps:$4 sm:$0xff]   ;;  %v4886_v3 = vld [vmem:[#allocation2 + $0xc4c] ss:$16 sps:$4 sm:$0xff]  }
 0x1ae   : > { %3524 = vmatpush1.bf16.msra.mxu1 %v4811_v10  ;;  %3484 = vmatprep.subr.bf16.mxu0 %v4816_v61  ;;  %v4881_v6 = vld [vmem:[#allocation2 + $0xac8] ss:$16 sps:$4 sm:$0xff]   ;;  %v4889_v8 = vld [vmem:[#allocation2 + $0xaec] ss:$16 sps:$4 sm:$0xff]  }
 0x1af   : > { %3525 = vmatprep.subr.bf16.mxu1 %v4819_v40  ;;  %v4884_v7 = vld [vmem:[#allocation2 + $0xc48] ss:$16 sps:$4 sm:$0xff]   ;;  %v4892_v9 = vld [vmem:[#allocation2 + $0xc6c] ss:$16 sps:$4 sm:$0xff]  }
 0x1b0   : > { %v4887_v10 = vld [vmem:[#allocation2 + $0xae8] ss:$16 sps:$4 sm:$0xff]   ;;  %v4895_v13 = vld [vmem:[#allocation2 + $0xc8c] ss:$16 sps:$4 sm:$0xff]  }
 0x1b1   : > { %3485 = vmatpush1.bf16.msra.mxu0 %v4814_v18  ;;  %v4898_v14 = vld [vmem:[#allocation2 + $0xd0c] ss:$16 sps:$4 sm:$0xff]   ;;  %v4893_v61 = vld [vmem:[#allocation2 + $0xc88] ss:$16 sps:$4 sm:$0xff]  }
 0x1b2   : > { %3526 = vmatpush1.bf16.msra.mxu1 %v4817_v19  ;;  %3560 = vmatprep.subr.bf16.mxu0 %v4826_v21  ;;  %v4896_v40 = vld [vmem:[#allocation2 + $0xd08] ss:$16 sps:$4 sm:$0xff]   ;;  %v4910_v21 = vld [vmem:[#allocation2 + $0xd4c] ss:$16 sps:$4 sm:$0xff]  }
 0x1b3   : > { %3527 = vmatprep.subr.bf16.mxu1 %v4823_v20  ;;  %v4899_v18 = vld [vmem:[#allocation2 + $0xca8] ss:$16 sps:$4 sm:$0xff]   ;;  %v4907_v20 = vld [vmem:[#allocation2 + $0xccc] ss:$16 sps:$4 sm:$0xff]  }
 0x1b4   : > { %4216 = vmatmul.mubr.msk.bf16.vlgmr.msra.gmra.mrb[28].mxu0 %vm1275_vm0, %v5221_v22  ;;  %v4902_v19 = vld [vmem:[#allocation2 + $0xd28] ss:$16 sps:$4 sm:$0xff]  }
 0x1b5   : > { %3561 = vmatpush1.bf16.msra.mxu0 %v4824_v28  ;;  %3592 = vmatprep.mubr.bf16.mxu0 %v5192_v41  ;;  %v4848_v41 = vld [vmem:[#allocation2 + $0xb88] ss:$16 sps:$4 sm:$0xff]  }
 0x1b6   : > { %3528 = vmatpush1.bf16.msra.mxu1 %v4821_v23  ;;  %3562 = vmatprep.subr.bf16.mxu0 %v4832_v30 }
 0x1b7   : > { %3529 = vmatprep.subr.bf16.mxu1 %v4829_v29 }
 0x1b9   : > { %3563 = vmatpush1.bf16.msra.mxu0 %v4830_v33 }
 0x1ba   : > { %3530 = vmatpush1.bf16.msra.mxu1 %v4827_v31  ;;  %3564 = vmatprep.subr.bf16.mxu0 %v4838_v35  ;;  %v4905_v35 = vld [vmem:[#allocation2 + $0xcc8] ss:$16 sps:$4 sm:$0xff]  }
 0x1bb   : > { %3531 = vmatprep.subr.bf16.mxu1 %v4835_v34 }
 0x1bd   : > { %3565 = vmatpush1.bf16.msra.mxu0 %v4836_v38 }
 0x1be   : > { %3532 = vmatpush1.bf16.msra.mxu1 %v4833_v36  ;;  %3566 = vmatprep.subr.bf16.mxu0 %v4844_v42  ;;  %v4908_v36 = vld [vmem:[#allocation2 + $0xd48] ss:$16 sps:$4 sm:$0xff]  }
 0x1bf   : > { %3533 = vmatprep.subr.bf16.mxu1 %v4841_v39 }
 0x1c1   : > { %3567 = vmatpush1.bf16.msra.mxu0 %v4842_v44  ;;  %v4916_v44 = vld [vmem:[#allocation2 + $0xd6c] ss:$16 sps:$4 sm:$0xff]  }
 0x1c2   : > { %3534 = vmatpush1.bf16.msra.mxu1 %v4839_v43  ;;  %3568 = vmatprep.subr.bf16.mxu0 %v4850_v46  ;;  %v4913_v43 = vld [vmem:[#allocation2 + $0xcec] ss:$16 sps:$4 sm:$0xff]  }
 0x1c3   : > { %3535 = vmatprep.subr.bf16.mxu1 %v4847_v45  ;;  %v4914_v45 = vld [vmem:[#allocation2 + $0xd68] ss:$16 sps:$4 sm:$0xff]  }
 0x1c5   : > { %3569 = vmatpush1.bf16.msra.mxu0 %v4848_v41 }
 0x1c6   : > { %3536 = vmatpush1.bf16.msra.mxu1 %v4845_v49  ;;  %3570 = vmatprep.subr.bf16.mxu0 %v4856_v15 }
 0x1c7   : > { %3537 = vmatprep.subr.bf16.mxu1 %v4853_v52 }
 0x1c9   : > { %3571 = vmatpush1.bf16.msra.mxu0 %v4854_v25 }
 0x1ca   : > { %3538 = vmatpush1.bf16.msra.mxu1 %v4851_v53  ;;  %3572 = vmatprep.subr.bf16.mxu0 %v4862_v55 }
 0x1cb   : > { %3539 = vmatprep.subr.bf16.mxu1 %v4859_v54 }
 0x1cd   : > { %3573 = vmatpush1.bf16.msra.mxu0 %v4860_v57 }
 0x1ce   : > { %3540 = vmatpush1.bf16.msra.mxu1 %v4857_v56  ;;  %3574 = vmatprep.subr.bf16.mxu0 %v4868_v0 }
 0x1cf   : > { %3541 = vmatprep.subr.bf16.mxu1 %v4865_v58 }
 0x1d1   : > { %3575 = vmatpush1.bf16.msra.mxu0 %v4866_v24 }
 0x1d2   : > { %3542 = vmatpush1.bf16.msra.mxu1 %v4863_v2  ;;  %3576 = vmatprep.subr.bf16.mxu0 %v4874_v32 }
 0x1d3   : > { %3543 = vmatprep.subr.bf16.mxu1 %v4871_v27 }
 0x1d5   : > { %3577 = vmatpush1.bf16.msra.mxu0 %v4872_v48 }
 0x1d6   : > { %3544 = vmatpush1.bf16.msra.mxu1 %v4869_v62  ;;  %3578 = vmatprep.subr.bf16.mxu0 %v4880_v26 }
 0x1d7   : > { %3545 = vmatprep.subr.bf16.mxu1 %v4877_v50 }
 0x1d9   : > { %3579 = vmatpush1.bf16.msra.mxu0 %v4878_v4 }
 0x1da   : > { %3546 = vmatpush1.bf16.msra.mxu1 %v4875_v51  ;;  %3580 = vmatprep.subr.bf16.mxu0 %v4886_v3 }
 0x1db   : > { %3547 = vmatprep.subr.bf16.mxu1 %v4883_v5 }
 0x1dd   : > { %3581 = vmatpush1.bf16.msra.mxu0 %v4884_v7 }
 0x1de   : > { %3548 = vmatpush1.bf16.msra.mxu1 %v4881_v6  ;;  %3582 = vmatprep.subr.bf16.mxu0 %v4892_v9 }
 0x1df   : > { %3549 = vmatprep.subr.bf16.mxu1 %v4889_v8 }
 0x1e1   : > { %3583 = vmatpush1.bf16.msra.mxu0 %v4890_v11 }
 0x1e2   : > { %3550 = vmatpush1.bf16.msra.mxu1 %v4887_v10  ;;  %3584 = vmatprep.subr.bf16.mxu0 %v4895_v13  ;;  %v3648_v10 = vlaneseq }
 0x1e3   : > { %3601 = vmatprep.subr.bf16.mxu1 %v4898_v14  ;;  %v3646_v14 = vld [vmem:[#allocation4] sm:$0xf] }
 0x1e4   : > { %v3649_v11 = vshrl.u32 %v3648_v10, 7 }
 0x1e5   : > { %3552 = vmatmul.mubr.bf16.vlgmr.msra.gmra.mrb[28].mxu1 %v5207_v59  ;;  %3585 = vmatpush1.bf16.msra.mxu0 %v4893_v61 }
 0x1e6   : > { %3602 = vmatpush1.bf16.msra.mxu1 %v4896_v40  ;;  %3586 = vmatprep.subr.bf16.mxu0 %v4901_v17  ;;  %v3650_v13 = vsub.s32 0, %v3649_v11  ;;  %v3654_v61 = vsub.s32 1, %v3649_v11 }
 0x1e7   : > { %3603 = vmatprep.subr.bf16.mxu1 %v4904_v63  ;;  %v2291_v23 = vpop.f32.mrb[12].mxu0  ;;  %3633 = vmatprep.mubr.bf16.mxu1 %v4999_v37 }
 0x1e8   : > { %v2332_v28 = vpop.f32.mrb[12].mxu1  ;;  %v2292_v29 = vadd.f32 %v2291_v23, %v5199_v47  ;;  %v2293_v30 = vpop.f32.mrb[13].mxu0  ;;  %v4911_v47 = vld [vmem:[#allocation2 + $0xce8] ss:$16 sps:$4 sm:$0xff]   ;;  %v3651_v63 = vrot.slane %v3646_v14, %v3650_v13 }
 0x1e9   : > { %v2334_v31 = vpop.f32.mrb[13].mxu1  ;;  %v2294_v33 = vadd.f32 %v2293_v30, %v5201_v1  ;;  %v2295_v34 = vpop.f32.mrb[14].mxu0  ;;  %3587 = vmatpush1.bf16.msra.mxu0 %v4899_v18 }
 0x1ea   : > { %v2336_v59 = vpop.f32.mrb[14].mxu1  ;;  %3604 = vmatpush1.bf16.msra.mxu1 %v4902_v19  ;;  %v2333_v38 = vadd.f32 %v2332_v28, %v2292_v29  ;;  %v2296_v39 = vpop.f32.mrb[15].mxu0  ;;  %3588 = vmatprep.subr.bf16.mxu0 %v4907_v20  ;;  %v3655_v20 = vrot.slane %v3646_v14, %v3654_v61 }
 0x1eb   : > { %v2337_v42 = vpop.f32.mrb[15].mxu1  ;;  %3605 = vmatprep.subr.bf16.mxu1 %v4910_v21  ;;  %v2335_v37 = vadd.f32 %v2334_v31, %v2294_v33 }
 0x1ec   : > { %v3662_v42 = vsub.s32 3, %v3649_v11 }
 0x1ed   : > { %3589 = vmatpush1.bf16.msra.mxu0 %v4905_v35 }
 0x1ee   : > { %3606 = vmatpush1.bf16.msra.mxu1 %v4908_v36  ;;  %3590 = vmatprep.subr.bf16.mxu0 %v4913_v43  ;;  %v3658_v36 = vsub.s32 2, %v3649_v11 }
 0x1ef   : > { %3607 = vmatprep.subr.bf16.mxu1 %v4916_v44 }
 0x1f1   : > { %3591 = vmatpush1.bf16.msra.mxu0 %v4911_v47 }
 0x1f2   : > { %3608 = vmatpush1.bf16.msra.mxu1 %v4914_v45 }
 0x1f4   : > { %3593 = vmatmul.mubr.bf16.vlgmr.msra.gmra.mrb[32].mxu0 %v5209_v60 }
 0x1f5   : > { %4217 = vmatmul.mubr.msk.bf16.vlgmr.msra.gmra.mrb[32].mxu1 %vm1275_vm0, %v5221_v22 }
 0x1f7   : > { %v2373_v1 = vpop.f32.mrb[16].mxu0 }
 0x1f8   : > { %v2374_v46 = vadd.f32 %v2373_v1, %v2333_v38  ;;  %v2375_v49 = vpop.f32.mrb[17].mxu0 }
 0x1f9   : > { %v2376_v41 = vadd.f32 %v2375_v49, %v2335_v37  ;;  %v2377_v52 = vpop.f32.mrb[18].mxu0  ;;  %v3659_v49 = vrot.slane %v3646_v14, %v3658_v36 }
 0x1fa   : > { %v2378_v15 = vpop.f32.mrb[19].mxu0 }
 0x228   : > { %v2414_v53 = vpop.f32.mrb[16].mxu1 }
 0x229   : > { %v2415_v25 = vadd.f32 %v2414_v53, %v5216_v12  ;;  %v2416_v54 = vpop.f32.mrb[17].mxu1  ;;  %v3663_v53 = vrot.slane %v3646_v14, %v3662_v42 }
 0x22a   : > { %v2417_v55 = vadd.f32 %v2416_v54, %v5218_v16  ;;  %v2418_v56 = vpop.f32.mrb[18].mxu1 }
 0x22b   : > { %v2419_v57 = vpop.f32.mrb[19].mxu1 }
 0x237   : > { %v2455_v58 = vpop.f32.mrb[20].mxu0 }
 0x238   : > { %v2496_v0 = vpop.f32.mrb[20].mxu1  ;;  %v2456_v60 = vadd.f32 %v2455_v58, %v2415_v25  ;;  %v2457_v2 = vpop.f32.mrb[21].mxu0 }
 0x239   : > { %v2498_v24 = vpop.f32.mrb[21].mxu1  ;;  %v2458_v22 = vadd.f32 %v2457_v2, %v2417_v55  ;;  %v2459_v27 = vpop.f32.mrb[22].mxu0 }
 0x23a   : > { %v2500_v32 = vpop.f32.mrb[22].mxu1  ;;  %v2497_v62 = vadd.f32 %v2496_v0, %v2456_v60  ;;  %v2460_v48 = vpop.f32.mrb[23].mxu0 }
 0x23b   : > { %v2501_v50 = vpop.f32.mrb[23].mxu1  ;;  %v2499_v26 = vadd.f32 %v2498_v24, %v2458_v22 }
 0x277   : > { %v3430_v51 = vpop.f32.mrb[24].mxu0 }
 0x278   : > { %v3471_v12 = vpop.f32.mrb[24].mxu1  ;;  %v3432_v5 = vpop.f32.mrb[25].mxu0 }
 0x279   : > { %v3472_v4 = vadd.f32 %v3471_v12, %v3430_v51  ;;  %v3473_v16 = vpop.f32.mrb[25].mxu1  ;;  %v3434_v6 = vpop.f32.mrb[26].mxu0 }
 0x27a   : > { %v3474_v3 = vadd.f32 %v3473_v16, %v3432_v5  ;;  %v3475_v7 = vpop.f32.mrb[26].mxu1  ;;  %v3435_v8 = vpop.f32.mrb[27].mxu0 }
 0x27b   : > { %v3476_v9 = vpop.f32.mrb[27].mxu1 }
 0x287   : > { %v3512_v40 = vpop.f32.mrb[28].mxu0 }
 0x288   : > { %v3513_v17 = vadd.f32 %v3512_v40, %v3472_v4  ;;  %v3514_v18 = vpop.f32.mrb[29].mxu0 }
 0x289   : > { %v3515_v19 = vadd.f32 %v3514_v18, %v3474_v3  ;;  %v3516_v21 = vpop.f32.mrb[30].mxu0 }
 0x28a   : > { %v3642_v23 = vadd.f32 %v3513_v17, %v2374_v46  ;;  %v3517_v28 = vpop.f32.mrb[31].mxu0 }
 0x28b   : > { %v3643_v29 = vadd.f32 %v3515_v19, %v2376_v41 }
 0x28c   : > { %v3668_v30 = vadd.f32 %v3651_v63, %v3642_v23 }
 0x28d   : > { %v3669_v31 = vadd.f32 %v3655_v20, %v3643_v29 }
 0x28e   : > { %3672 = vst [vmem:[%s5239_s24] sm:$0xff] %v3668_v30 }
 0x28f   : > { %3673 = vst [vmem:[%s5239_s24 + $0x8] sm:$0xff] %v3669_v31 }
 0x2b8   : > { %v3553_v33 = vpop.f32.mrb[28].mxu1 }
 0x2b9   : > { %v3555_v34 = vpop.f32.mrb[29].mxu1 }
 0x2ba   : > { %v3557_v59 = vpop.f32.mrb[30].mxu1 }
 0x2bb   : > { %v3558_v35 = vpop.f32.mrb[31].mxu1 }
 0x2c7   : > { %v3594_v38 = vpop.f32.mrb[32].mxu0 }
 0x2c8   : > { %v3635_v39 = vpop.f32.mrb[32].mxu1  ;;  %v3595_v43 = vadd.f32 %v3594_v38, %v3553_v33  ;;  %v3596_v44 = vpop.f32.mrb[33].mxu0 }
 0x2c9   : > { %v3637_v37 = vpop.f32.mrb[33].mxu1  ;;  %v3597_v47 = vadd.f32 %v3596_v44, %v3555_v34  ;;  %v3598_v45 = vpop.f32.mrb[34].mxu0 }
 0x2ca   : > { %v3639_v1 = vpop.f32.mrb[34].mxu1  ;;  %v3636_v46 = vadd.f32 %v3635_v39, %v3595_v43  ;;  %v3599_v41 = vpop.f32.mrb[35].mxu0 }
 0x2cb   : > { %v3640_v52 = vpop.f32.mrb[35].mxu1  ;;  %v3638_v15 = vadd.f32 %v3637_v37, %v3597_v47 }
 0x2cc   : > { %v3644_v25 = vadd.f32 %v3636_v46, %v2497_v62 }
 0x2cd   : > { %v3645_v54 = vadd.f32 %v3638_v15, %v2499_v26 }
 0x2ce   : > { %v3670_v55 = vadd.f32 %v3659_v49, %v3644_v25 }
 0x2cf   : > { %v3671_v56 = vadd.f32 %v3663_v53, %v3645_v54 }
 0x2d0   : > { %3674 = vst [vmem:[%s5239_s24 + $0x10] sm:$0xff] %v3670_v55 }
 0x2d1   : > { %3675 = vst [vmem:[%s5239_s24 + $0x18] sm:$0xff] %v3671_v56 }
 0x2d2 PF: > { %s15_s12 = sadd.s32 1, %s4993_s12  }
 0x2d3   : > { %p12_p9 = scmp.ge.s32.totalorder %s15_s12, 6  }
 0x2d5   :  { %14 = sbr.rel (!%p12_p9) target bundleno = 2 (0x2), region = 73 }
 0x2dc   :  { %3697 = vsyncpa [#allocation3], 1 }
 0x2dd   :  { %3699 = vsyncpa [#allocation3 + $0x1], 1 }
 0x2de   :  { %3700 = vsyncpa [#allocation5], 1 }

</bundles_post_ra>
